<compile_context>
chip_gen: v5e
topology: v5e:2x2
jax: 0.10.0
libtpu: 0.0.40
codegen_flags: <defaults>
</compile_context>

<pallas_src>
import jax
import jax.numpy as jnp
from jax.experimental import pallas as pl
from jax.experimental.pallas import tpu as pltpu

# ----------------------------- model hyper-params -----------------------------
NUM_CLASSES = 1
INPUT_SIZE = 4
HIDDEN = 32
NUM_LAYERS = 2        # kernel wavefront is specialized for 2 layers
FC1 = 128

BATCH = 2
SEQ = 8

assert NUM_LAYERS == 2, "wavefront kernel below is specialized for 2 LSTM layers"


# --------------------------------- kernel -------------------------------------
def make_lstm_mlp_kernel(T, BP, H):
    """Single-grid-step kernel. Ref order:
      x_flat   (T*BP, D_in)        time-major, batch padded to BP rows
      wih0_t   (D_in, 4H)          layer-0 input proj, gates [i,f,o,2*g]
      b0       (1, 4H)             layer-0 combined bias, same order/scaling
      rhs      (2H, 8H)            block-diag fused recurrent RHS [[whh0,wih1],[0,whh1]]
      b1       (1, 4H)             layer-1 combined bias
      wfc1_t   (H, 128), bfc1 (1,128), wfc2_row (1,128), bfc2 (1,C)
      out_ref  (2*BP, C)
    """

    def kernel(x_ref, wih0_ref, b0_ref, rhs_ref, b1_ref,
               wfc1_ref, bfc1_ref, wfc2_ref, bfc2_ref, out_ref):
        # Hoisted layer-0 input projection (+bias): one MXU pass over the whole sequence.
        pre0 = jnp.dot(x_ref[...], wih0_ref[...],
                       preferred_element_type=jnp.float32) + b0_ref[...]       # (T*BP, 4H)
        b1 = b1_ref[...]                                                        # (1, 4H)
        # Per-step additive term for the fused [layer0 | layer1] gates (hoisted).
        pre_all = jnp.concatenate(
            [pre0, jnp.broadcast_to(b1, (T * BP, 4 * H))], axis=1)              # (T*BP, 8H)
        rhs = rhs_ref[...]                                                      # (2H, 8H)

        def cell(s4, c):
            # s4 = sigmoid(gate pre-activations), gate order [i, f, o, g*2].
            i_g = s4[:, 0:H]
            f_g = s4[:, H:2 * H]
            o_g = s4[:, 2 * H:3 * H]
            g_g = 2.0 * s4[:, 3 * H:4 * H] - 1.0      # == tanh(original g pre-act)
            c_new = f_g * c + i_g * g_g
            h_new = o_g * jnp.tanh(c_new)
            return h_new, c_new

        zeros = jnp.zeros((BP, H), jnp.float32)

        # Prologue: layer-0 step 0 (h0 == 0 -> no recurrent matmul needed).
        s = jax.nn.sigmoid(pre_all[0:BP, 0:4 * H])
        h0, c0 = cell(s, zeros)
        h1, c1 = zeros, zeros

        # Wavefront: iteration k runs layer-0 step k and layer-1 step k-1.
        # One fused block-diagonal MXU pass + one sigmoid push per iteration;
        # the two cell updates are independent chains the scheduler can overlap.
        for k in range(1, T):
            lhs = jnp.concatenate([h0, h1], axis=1)                             # (BP, 2H)
            res = jnp.dot(lhs, rhs, preferred_element_type=jnp.float32)         # (BP, 8H)
            s = jax.nn.sigmoid(res + pre_all[k * BP:(k + 1) * BP, :])
            h0_new, c0 = cell(s[:, 0:4 * H], c0)
            h1, c1 = cell(s[:, 4 * H:8 * H], c1)
            h0 = h0_new

        # Epilogue: layer-1 step T-1 consumes h0_{T-1}.
        lhs = jnp.concatenate([h0, h1], axis=1)
        res = jnp.dot(lhs, rhs, preferred_element_type=jnp.float32)
        s = jax.nn.sigmoid(res[:, 4 * H:8 * H] + b1)
        h1, c1 = cell(s, c1)

        # hn.view(-1, H) -> ReLU -> fc_1 -> ReLU -> fc_2
        hn = jnp.concatenate([h0, h1], axis=0)                                  # (2*BP, H)
        z = jnp.maximum(hn, 0.0)
        z = jnp.dot(z, wfc1_ref[...], preferred_element_type=jnp.float32) + bfc1_ref[...]
        z = jnp.maximum(z, 0.0)
        # fc_2 (out_features == 1): VPU multiply + lane reduction (no 1-lane MXU pass).
        z = jnp.sum(z * wfc2_ref[...], axis=-1, keepdims=True) + bfc2_ref[...]
        out_ref[...] = z.astype(out_ref.dtype)

    return kernel


# --------------------------------- wrapper ------------------------------------
def lstm_forward(x_btd, params):
    """x_btd: (batch, seq, input_size) float32 -> (num_layers*batch, num_classes)."""
    B, T, D = x_btd.shape
    H = HIDDEN
    BP = max(8, ((B + 7) // 8) * 8)   # pad batch to a full sublane group

    # Batch padding + time-major flatten: row t*BP + b is (time t, batch b);
    # every per-step slice is then 8-sublane aligned (pure layout plumbing).
    x_pad = jnp.zeros((BP, T, D), x_btd.dtype).at[:B].set(x_btd)
    x_flat = jnp.transpose(x_pad, (1, 0, 2)).reshape(T * BP, D)

    def perm_scale(w):
        # PyTorch gate order [i,f,g,o] -> [i,f,o,g]; pre-scale g pre-activation by 2
        # so the kernel computes tanh(x) as 2*sigmoid(2x)-1 with a single sigmoid push.
        return jnp.concatenate(
            [w[..., :2 * H], w[..., 3 * H:4 * H], 2.0 * w[..., 2 * H:3 * H]], axis=-1)

    (wih0_t, whh0_t, b0), (wih1_t, whh1_t, b1) = params["layers"]
    wih0_p = perm_scale(wih0_t)          # (D, 4H)
    b0_p = perm_scale(b0)                # (1, 4H)
    b1_p = perm_scale(b1)                # (1, 4H)

    # Block-diagonal fused recurrent RHS (2H, 8H): [[whh0, wih1], [0, whh1]].
    rhs = jnp.zeros((2 * H, 8 * H), jnp.float32)
    rhs = rhs.at[0:H, 0:4 * H].set(perm_scale(whh0_t))
    rhs = rhs.at[0:H, 4 * H:8 * H].set(perm_scale(wih1_t))
    rhs = rhs.at[H:2 * H, 4 * H:8 * H].set(perm_scale(whh1_t))

    args = [x_flat, wih0_p, b0_p, rhs, b1_p,
            params["wfc1_t"], params["bfc1"], params["wfc2_row"], params["bfc2"]]

    vspec = pl.BlockSpec(memory_space=pltpu.MemorySpace.VMEM)
    kernel = make_lstm_mlp_kernel(T, BP, H)

    out_full = pl.pallas_call(
        kernel,
        out_shape=jax.ShapeDtypeStruct((NUM_LAYERS * BP, NUM_CLASSES), jnp.float32),
        in_specs=[vspec] * len(args),
        out_specs=vspec,
    )(*args)

    # hn.view(-1, hidden) row order: [layer-0 batch rows, layer-1 batch rows]; drop padding.
    return jnp.concatenate([out_full[l * BP:l * BP + B] for l in range(NUM_LAYERS)], axis=0)


# ------------------------- deterministic parameter init ------------------------
def init_params(key):
    ks = iter(jax.random.split(key, 4 * NUM_LAYERS + 4))
    params = {"layers": []}
    bound = 1.0 / jnp.sqrt(jnp.float32(HIDDEN))
    for l in range(NUM_LAYERS):
        d_in = INPUT_SIZE if l == 0 else HIDDEN
        w_ih = jax.random.uniform(next(ks), (4 * HIDDEN, d_in), jnp.float32, -bound, bound)
        w_hh = jax.random.uniform(next(ks), (4 * HIDDEN, HIDDEN), jnp.float32, -bound, bound)
        b_ih = jax.random.uniform(next(ks), (4 * HIDDEN,), jnp.float32, -bound, bound)
        b_hh = jax.random.uniform(next(ks), (4 * HIDDEN,), jnp.float32, -bound, bound)
        # Stored in PyTorch gate order [i, f, g, o]; wrapper permutes/scales.
        params["layers"].append((w_ih.T, w_hh.T, (b_ih + b_hh).reshape(1, 4 * HIDDEN)))
    b1 = 1.0 / jnp.sqrt(jnp.float32(HIDDEN))
    w_fc1 = jax.random.uniform(next(ks), (FC1, HIDDEN), jnp.float32, -b1, b1)
    b_fc1 = jax.random.uniform(next(ks), (FC1,), jnp.float32, -b1, b1)
    b2 = 1.0 / jnp.sqrt(jnp.float32(FC1))
    w_fc2 = jax.random.uniform(next(ks), (NUM_CLASSES, FC1), jnp.float32, -b2, b2)
    b_fc2 = jax.random.uniform(next(ks), (NUM_CLASSES,), jnp.float32, -b2, b2)
    params["wfc1_t"] = w_fc1.T                       # (H, 128)
    params["bfc1"] = b_fc1.reshape(1, FC1)           # (1, 128)
    params["wfc2_row"] = w_fc2.reshape(1, FC1)       # (1, 128)
    params["bfc2"] = b_fc2.reshape(1, NUM_CLASSES)   # (1, 1)
    return params


# ------------------------------ pure-JAX reference ------------------------------
def reference_forward(x_btd, params):
    """Unpermuted, unscaled, unpadded PyTorch-order reference (f32, HIGHEST precision)."""
    B, T, _ = x_btd.shape
    hi = jax.lax.Precision.HIGHEST
    inp = x_btd
    hn_list = []
    for l in range(NUM_LAYERS):
        wih_t, whh_t, b = params["layers"][l]
        h = jnp.zeros((B, HIDDEN), jnp.float32)
        c = jnp.zeros((B, HIDDEN), jnp.float32)
        outs = []
        for t in range(T):
            gates = (jnp.dot(inp[:, t, :], wih_t, precision=hi)
                     + jnp.dot(h, whh_t, precision=hi) + b)
            i_g = jax.nn.sigmoid(gates[:, 0:HIDDEN])
            f_g = jax.nn.sigmoid(gates[:, HIDDEN:2 * HIDDEN])
            g_g = jnp.tanh(gates[:, 2 * HIDDEN:3 * HIDDEN])
            o_g = jax.nn.sigmoid(gates[:, 3 * HIDDEN:4 * HIDDEN])
            c = f_g * c + i_g * g_g
            h = o_g * jnp.tanh(c)
            outs.append(h)
        inp = jnp.stack(outs, axis=1)
        hn_list.append(h)
    hn = jnp.concatenate(hn_list, axis=0)
    z = jnp.maximum(hn, 0.0)
    z = jnp.dot(z, params["wfc1_t"], precision=hi) + params["bfc1"]
    z = jnp.maximum(z, 0.0)
    z = jnp.dot(z, params["wfc2_row"].T, precision=hi) + params["bfc2"]
    return z


# ----------------------------------- main --------------------------------------
if __name__ == "__main__":
    key = jax.random.PRNGKey(0)
    k_x, k_p = jax.random.split(key)
    x = jax.random.normal(k_x, (BATCH, SEQ, INPUT_SIZE), jnp.float32)
    params = init_params(k_p)

    out = lstm_forward(x, params)
    out = jax.block_until_ready(out)

    ref = reference_forward(x, params)
    assert out.shape == (NUM_LAYERS * BATCH, NUM_CLASSES)
    assert jnp.allclose(out, ref, atol=2e-4, rtol=2e-4)
    print("KERNEL_OK")
</pallas_src>

<mosaic_0001>
module attributes {stable_mosaic.version = 11 : i64} {
  func.func @kernel(%arg0: memref<64x4xf32, #tpu.memory_space<vmem>>, %arg1: memref<4x128xf32, #tpu.memory_space<vmem>>, %arg2: memref<1x128xf32, #tpu.memory_space<vmem>>, %arg3: memref<64x256xf32, #tpu.memory_space<vmem>>, %arg4: memref<1x128xf32, #tpu.memory_space<vmem>>, %arg5: memref<32x128xf32, #tpu.memory_space<vmem>>, %arg6: memref<1x128xf32, #tpu.memory_space<vmem>>, %arg7: memref<1x128xf32, #tpu.memory_space<vmem>>, %arg8: memref<1x1xf32, #tpu.memory_space<vmem>>, %arg9: memref<16x1xf32, #tpu.memory_space<vmem>>) attributes {dimension_semantics = [], scalar_prefetch = 0 : i64, scratch_operands = 0 : i64, tpu.core_type = #tpu.core_type<tc>} {
    %c0 = arith.constant 0 : index
    %c0_0 = arith.constant 0 : index
    %0 = vector.load %arg0[%c0, %c0_0] : memref<64x4xf32, #tpu.memory_space<vmem>>, vector<64x4xf32>
    %c0_1 = arith.constant 0 : index
    %c0_2 = arith.constant 0 : index
    %1 = vector.load %arg1[%c0_1, %c0_2] : memref<4x128xf32, #tpu.memory_space<vmem>>, vector<4x128xf32>
    %cst = arith.constant dense<0.000000e+00> : vector<64x128xf32>
    %2 = tpu.matmul %0, %1, %cst {dimension_numbers = #tpu.dot_dimension_numbers<[1], [0], [0], [1], [0, 0, 1, 1], [], []>} : vector<64x4xf32>, vector<4x128xf32>, vector<64x128xf32> -> vector<64x128xf32>
    %c0_3 = arith.constant 0 : index
    %c0_4 = arith.constant 0 : index
    %3 = vector.load %arg2[%c0_3, %c0_4] : memref<1x128xf32, #tpu.memory_space<vmem>>, vector<1x128xf32>
    %4 = vector.broadcast %3 : vector<1x128xf32> to vector<64x128xf32>
    %5 = arith.addf %2, %4 : vector<64x128xf32>
    %c0_5 = arith.constant 0 : index
    %c0_6 = arith.constant 0 : index
    %6 = vector.load %arg4[%c0_5, %c0_6] : memref<1x128xf32, #tpu.memory_space<vmem>>, vector<1x128xf32>
    %7 = vector.shape_cast %6 : vector<1x128xf32> to vector<1x128xf32>
    %8 = vector.broadcast %7 : vector<1x128xf32> to vector<64x128xf32>
    %9 = tpu.concatenate %5, %8 in 1 : vector<64x128xf32>, vector<64x128xf32> -> vector<64x256xf32>
    %c0_7 = arith.constant 0 : index
    %c0_8 = arith.constant 0 : index
    %10 = vector.load %arg3[%c0_7, %c0_8] : memref<64x256xf32, #tpu.memory_space<vmem>>, vector<64x256xf32>
    %cst_9 = arith.constant 0.000000e+00 : f32
    %11 = vector.broadcast %cst_9 : f32 to vector<8x32xf32>
    %12 = vector.extract_strided_slice %9 {offsets = [0, 0], sizes = [8, 128], strides = [1, 1]} : vector<64x256xf32> to vector<8x128xf32>
    %13 = arith.negf %12 : vector<8x128xf32>
    %14 = math.exp %13 : vector<8x128xf32>
    %cst_10 = arith.constant 1.000000e+00 : f32
    %15 = vector.broadcast %cst_10 : f32 to vector<8x128xf32>
    %16 = arith.addf %15, %14 : vector<8x128xf32>
    %17 = arith.divf %15, %16 : vector<8x128xf32>
    %18 = vector.extract_strided_slice %17 {offsets = [0, 0], sizes = [8, 32], strides = [1, 1]} : vector<8x128xf32> to vector<8x32xf32>
    %19 = vector.extract_strided_slice %17 {offsets = [0, 32], sizes = [8, 32], strides = [1, 1]} : vector<8x128xf32> to vector<8x32xf32>
    %20 = vector.extract_strided_slice %17 {offsets = [0, 64], sizes = [8, 32], strides = [1, 1]} : vector<8x128xf32> to vector<8x32xf32>
    %21 = vector.extract_strided_slice %17 {offsets = [0, 96], sizes = [8, 32], strides = [1, 1]} : vector<8x128xf32> to vector<8x32xf32>
    %cst_11 = arith.constant 2.000000e+00 : f32
    %22 = vector.broadcast %cst_11 : f32 to vector<8x32xf32>
    %23 = arith.mulf %22, %21 : vector<8x32xf32>
    %cst_12 = arith.constant 1.000000e+00 : f32
    %24 = vector.broadcast %cst_12 : f32 to vector<8x32xf32>
    %25 = arith.subf %23, %24 : vector<8x32xf32>
    %26 = arith.mulf %19, %11 : vector<8x32xf32>
    %27 = arith.mulf %18, %25 : vector<8x32xf32>
    %28 = arith.addf %26, %27 : vector<8x32xf32>
    %29 = math.tanh %28 : vector<8x32xf32>
    %30 = arith.mulf %20, %29 : vector<8x32xf32>
    %31 = tpu.concatenate %30, %11 in 1 : vector<8x32xf32>, vector<8x32xf32> -> vector<8x64xf32>
    %cst_13 = arith.constant dense<0.000000e+00> : vector<8x256xf32>
    %32 = tpu.matmul %31, %10, %cst_13 {dimension_numbers = #tpu.dot_dimension_numbers<[1], [0], [0], [1], [0, 0, 1, 1], [], []>} : vector<8x64xf32>, vector<64x256xf32>, vector<8x256xf32> -> vector<8x256xf32>
    %33 = vector.extract_strided_slice %9 {offsets = [8, 0], sizes = [8, 256], strides = [1, 1]} : vector<64x256xf32> to vector<8x256xf32>
    %34 = arith.addf %32, %33 : vector<8x256xf32>
    %35 = arith.negf %34 : vector<8x256xf32>
    %36 = math.exp %35 : vector<8x256xf32>
    %cst_14 = arith.constant 1.000000e+00 : f32
    %37 = vector.broadcast %cst_14 : f32 to vector<8x256xf32>
    %38 = arith.addf %37, %36 : vector<8x256xf32>
    %39 = arith.divf %37, %38 : vector<8x256xf32>
    %40 = vector.extract_strided_slice %39 {offsets = [0, 0], sizes = [8, 128], strides = [1, 1]} : vector<8x256xf32> to vector<8x128xf32>
    %41 = vector.extract_strided_slice %40 {offsets = [0, 0], sizes = [8, 32], strides = [1, 1]} : vector<8x128xf32> to vector<8x32xf32>
    %42 = vector.extract_strided_slice %40 {offsets = [0, 32], sizes = [8, 32], strides = [1, 1]} : vector<8x128xf32> to vector<8x32xf32>
    %43 = vector.extract_strided_slice %40 {offsets = [0, 64], sizes = [8, 32], strides = [1, 1]} : vector<8x128xf32> to vector<8x32xf32>
    %44 = vector.extract_strided_slice %40 {offsets = [0, 96], sizes = [8, 32], strides = [1, 1]} : vector<8x128xf32> to vector<8x32xf32>
    %cst_15 = arith.constant 2.000000e+00 : f32
    %45 = vector.broadcast %cst_15 : f32 to vector<8x32xf32>
    %46 = arith.mulf %45, %44 : vector<8x32xf32>
    %cst_16 = arith.constant 1.000000e+00 : f32
    %47 = vector.broadcast %cst_16 : f32 to vector<8x32xf32>
    %48 = arith.subf %46, %47 : vector<8x32xf32>
    %49 = arith.mulf %42, %28 : vector<8x32xf32>
    %50 = arith.mulf %41, %48 : vector<8x32xf32>
    %51 = arith.addf %49, %50 : vector<8x32xf32>
    %52 = math.tanh %51 : vector<8x32xf32>
    %53 = arith.mulf %43, %52 : vector<8x32xf32>
    %54 = vector.extract_strided_slice %39 {offsets = [0, 128], sizes = [8, 128], strides = [1, 1]} : vector<8x256xf32> to vector<8x128xf32>
    %55 = vector.extract_strided_slice %54 {offsets = [0, 0], sizes = [8, 32], strides = [1, 1]} : vector<8x128xf32> to vector<8x32xf32>
    %56 = vector.extract_strided_slice %54 {offsets = [0, 32], sizes = [8, 32], strides = [1, 1]} : vector<8x128xf32> to vector<8x32xf32>
    %57 = vector.extract_strided_slice %54 {offsets = [0, 64], sizes = [8, 32], strides = [1, 1]} : vector<8x128xf32> to vector<8x32xf32>
    %58 = vector.extract_strided_slice %54 {offsets = [0, 96], sizes = [8, 32], strides = [1, 1]} : vector<8x128xf32> to vector<8x32xf32>
    %cst_17 = arith.constant 2.000000e+00 : f32
    %59 = vector.broadcast %cst_17 : f32 to vector<8x32xf32>
    %60 = arith.mulf %59, %58 : vector<8x32xf32>
    %cst_18 = arith.constant 1.000000e+00 : f32
    %61 = vector.broadcast %cst_18 : f32 to vector<8x32xf32>
    %62 = arith.subf %60, %61 : vector<8x32xf32>
    %63 = arith.mulf %56, %11 : vector<8x32xf32>
    %64 = arith.mulf %55, %62 : vector<8x32xf32>
    %65 = arith.addf %63, %64 : vector<8x32xf32>
    %66 = math.tanh %65 : vector<8x32xf32>
    %67 = arith.mulf %57, %66 : vector<8x32xf32>
    %68 = tpu.concatenate %53, %67 in 1 : vector<8x32xf32>, vector<8x32xf32> -> vector<8x64xf32>
    %cst_19 = arith.constant dense<0.000000e+00> : vector<8x256xf32>
    %69 = tpu.matmul %68, %10, %cst_19 {dimension_numbers = #tpu.dot_dimension_numbers<[1], [0], [0], [1], [0, 0, 1, 1], [], []>} : vector<8x64xf32>, vector<64x256xf32>, vector<8x256xf32> -> vector<8x256xf32>
    %70 = vector.extract_strided_slice %9 {offsets = [16, 0], sizes = [8, 256], strides = [1, 1]} : vector<64x256xf32> to vector<8x256xf32>
    %71 = arith.addf %69, %70 : vector<8x256xf32>
    %72 = arith.negf %71 : vector<8x256xf32>
    %73 = math.exp %72 : vector<8x256xf32>
    %cst_20 = arith.constant 1.000000e+00 : f32
    %74 = vector.broadcast %cst_20 : f32 to vector<8x256xf32>
    %75 = arith.addf %74, %73 : vector<8x256xf32>
    %76 = arith.divf %74, %75 : vector<8x256xf32>
    %77 = vector.extract_strided_slice %76 {offsets = [0, 0], sizes = [8, 128], strides = [1, 1]} : vector<8x256xf32> to vector<8x128xf32>
    %78 = vector.extract_strided_slice %77 {offsets = [0, 0], sizes = [8, 32], strides = [1, 1]} : vector<8x128xf32> to vector<8x32xf32>
    %79 = vector.extract_strided_slice %77 {offsets = [0, 32], sizes = [8, 32], strides = [1, 1]} : vector<8x128xf32> to vector<8x32xf32>
    %80 = vector.extract_strided_slice %77 {offsets = [0, 64], sizes = [8, 32], strides = [1, 1]} : vector<8x128xf32> to vector<8x32xf32>
    %81 = vector.extract_strided_slice %77 {offsets = [0, 96], sizes = [8, 32], strides = [1, 1]} : vector<8x128xf32> to vector<8x32xf32>
    %cst_21 = arith.constant 2.000000e+00 : f32
    %82 = vector.broadcast %cst_21 : f32 to vector<8x32xf32>
    %83 = arith.mulf %82, %81 : vector<8x32xf32>
    %cst_22 = arith.constant 1.000000e+00 : f32
    %84 = vector.broadcast %cst_22 : f32 to vector<8x32xf32>
    %85 = arith.subf %83, %84 : vector<8x32xf32>
    %86 = arith.mulf %79, %51 : vector<8x32xf32>
    %87 = arith.mulf %78, %85 : vector<8x32xf32>
    %88 = arith.addf %86, %87 : vector<8x32xf32>
    %89 = math.tanh %88 : vector<8x32xf32>
    %90 = arith.mulf %80, %89 : vector<8x32xf32>
    %91 = vector.extract_strided_slice %76 {offsets = [0, 128], sizes = [8, 128], strides = [1, 1]} : vector<8x256xf32> to vector<8x128xf32>
    %92 = vector.extract_strided_slice %91 {offsets = [0, 0], sizes = [8, 32], strides = [1, 1]} : vector<8x128xf32> to vector<8x32xf32>
    %93 = vector.extract_strided_slice %91 {offsets = [0, 32], sizes = [8, 32], strides = [1, 1]} : vector<8x128xf32> to vector<8x32xf32>
    %94 = vector.extract_strided_slice %91 {offsets = [0, 64], sizes = [8, 32], strides = [1, 1]} : vector<8x128xf32> to vector<8x32xf32>
    %95 = vector.extract_strided_slice %91 {offsets = [0, 96], sizes = [8, 32], strides = [1, 1]} : vector<8x128xf32> to vector<8x32xf32>
    %cst_23 = arith.constant 2.000000e+00 : f32
    %96 = vector.broadcast %cst_23 : f32 to vector<8x32xf32>
    %97 = arith.mulf %96, %95 : vector<8x32xf32>
    %cst_24 = arith.constant 1.000000e+00 : f32
    %98 = vector.broadcast %cst_24 : f32 to vector<8x32xf32>
    %99 = arith.subf %97, %98 : vector<8x32xf32>
    %100 = arith.mulf %93, %65 : vector<8x32xf32>
    %101 = arith.mulf %92, %99 : vector<8x32xf32>
    %102 = arith.addf %100, %101 : vector<8x32xf32>
    %103 = math.tanh %102 : vector<8x32xf32>
    %104 = arith.mulf %94, %103 : vector<8x32xf32>
    %105 = tpu.concatenate %90, %104 in 1 : vector<8x32xf32>, vector<8x32xf32> -> vector<8x64xf32>
    %cst_25 = arith.constant dense<0.000000e+00> : vector<8x256xf32>
    %106 = tpu.matmul %105, %10, %cst_25 {dimension_numbers = #tpu.dot_dimension_numbers<[1], [0], [0], [1], [0, 0, 1, 1], [], []>} : vector<8x64xf32>, vector<64x256xf32>, vector<8x256xf32> -> vector<8x256xf32>
    %107 = vector.extract_strided_slice %9 {offsets = [24, 0], sizes = [8, 256], strides = [1, 1]} : vector<64x256xf32> to vector<8x256xf32>
    %108 = arith.addf %106, %107 : vector<8x256xf32>
    %109 = arith.negf %108 : vector<8x256xf32>
    %110 = math.exp %109 : vector<8x256xf32>
    %cst_26 = arith.constant 1.000000e+00 : f32
    %111 = vector.broadcast %cst_26 : f32 to vector<8x256xf32>
    %112 = arith.addf %111, %110 : vector<8x256xf32>
    %113 = arith.divf %111, %112 : vector<8x256xf32>
    %114 = vector.extract_strided_slice %113 {offsets = [0, 0], sizes = [8, 128], strides = [1, 1]} : vector<8x256xf32> to vector<8x128xf32>
    %115 = vector.extract_strided_slice %114 {offsets = [0, 0], sizes = [8, 32], strides = [1, 1]} : vector<8x128xf32> to vector<8x32xf32>
    %116 = vector.extract_strided_slice %114 {offsets = [0, 32], sizes = [8, 32], strides = [1, 1]} : vector<8x128xf32> to vector<8x32xf32>
    %117 = vector.extract_strided_slice %114 {offsets = [0, 64], sizes = [8, 32], strides = [1, 1]} : vector<8x128xf32> to vector<8x32xf32>
    %118 = vector.extract_strided_slice %114 {offsets = [0, 96], sizes = [8, 32], strides = [1, 1]} : vector<8x128xf32> to vector<8x32xf32>
    %cst_27 = arith.constant 2.000000e+00 : f32
    %119 = vector.broadcast %cst_27 : f32 to vector<8x32xf32>
    %120 = arith.mulf %119, %118 : vector<8x32xf32>
    %cst_28 = arith.constant 1.000000e+00 : f32
    %121 = vector.broadcast %cst_28 : f32 to vector<8x32xf32>
    %122 = arith.subf %120, %121 : vector<8x32xf32>
    %123 = arith.mulf %116, %88 : vector<8x32xf32>
    %124 = arith.mulf %115, %122 : vector<8x32xf32>
    %125 = arith.addf %123, %124 : vector<8x32xf32>
    %126 = math.tanh %125 : vector<8x32xf32>
    %127 = arith.mulf %117, %126 : vector<8x32xf32>
    %128 = vector.extract_strided_slice %113 {offsets = [0, 128], sizes = [8, 128], strides = [1, 1]} : vector<8x256xf32> to vector<8x128xf32>
    %129 = vector.extract_strided_slice %128 {offsets = [0, 0], sizes = [8, 32], strides = [1, 1]} : vector<8x128xf32> to vector<8x32xf32>
    %130 = vector.extract_strided_slice %128 {offsets = [0, 32], sizes = [8, 32], strides = [1, 1]} : vector<8x128xf32> to vector<8x32xf32>
    %131 = vector.extract_strided_slice %128 {offsets = [0, 64], sizes = [8, 32], strides = [1, 1]} : vector<8x128xf32> to vector<8x32xf32>
    %132 = vector.extract_strided_slice %128 {offsets = [0, 96], sizes = [8, 32], strides = [1, 1]} : vector<8x128xf32> to vector<8x32xf32>
    %cst_29 = arith.constant 2.000000e+00 : f32
    %133 = vector.broadcast %cst_29 : f32 to vector<8x32xf32>
    %134 = arith.mulf %133, %132 : vector<8x32xf32>
    %cst_30 = arith.constant 1.000000e+00 : f32
    %135 = vector.broadcast %cst_30 : f32 to vector<8x32xf32>
    %136 = arith.subf %134, %135 : vector<8x32xf32>
    %137 = arith.mulf %130, %102 : vector<8x32xf32>
    %138 = arith.mulf %129, %136 : vector<8x32xf32>
    %139 = arith.addf %137, %138 : vector<8x32xf32>
    %140 = math.tanh %139 : vector<8x32xf32>
    %141 = arith.mulf %131, %140 : vector<8x32xf32>
    %142 = tpu.concatenate %127, %141 in 1 : vector<8x32xf32>, vector<8x32xf32> -> vector<8x64xf32>
    %cst_31 = arith.constant dense<0.000000e+00> : vector<8x256xf32>
    %143 = tpu.matmul %142, %10, %cst_31 {dimension_numbers = #tpu.dot_dimension_numbers<[1], [0], [0], [1], [0, 0, 1, 1], [], []>} : vector<8x64xf32>, vector<64x256xf32>, vector<8x256xf32> -> vector<8x256xf32>
    %144 = vector.extract_strided_slice %9 {offsets = [32, 0], sizes = [8, 256], strides = [1, 1]} : vector<64x256xf32> to vector<8x256xf32>
    %145 = arith.addf %143, %144 : vector<8x256xf32>
    %146 = arith.negf %145 : vector<8x256xf32>
    %147 = math.exp %146 : vector<8x256xf32>
    %cst_32 = arith.constant 1.000000e+00 : f32
    %148 = vector.broadcast %cst_32 : f32 to vector<8x256xf32>
    %149 = arith.addf %148, %147 : vector<8x256xf32>
    %150 = arith.divf %148, %149 : vector<8x256xf32>
    %151 = vector.extract_strided_slice %150 {offsets = [0, 0], sizes = [8, 128], strides = [1, 1]} : vector<8x256xf32> to vector<8x128xf32>
    %152 = vector.extract_strided_slice %151 {offsets = [0, 0], sizes = [8, 32], strides = [1, 1]} : vector<8x128xf32> to vector<8x32xf32>
    %153 = vector.extract_strided_slice %151 {offsets = [0, 32], sizes = [8, 32], strides = [1, 1]} : vector<8x128xf32> to vector<8x32xf32>
    %154 = vector.extract_strided_slice %151 {offsets = [0, 64], sizes = [8, 32], strides = [1, 1]} : vector<8x128xf32> to vector<8x32xf32>
    %155 = vector.extract_strided_slice %151 {offsets = [0, 96], sizes = [8, 32], strides = [1, 1]} : vector<8x128xf32> to vector<8x32xf32>
    %cst_33 = arith.constant 2.000000e+00 : f32
    %156 = vector.broadcast %cst_33 : f32 to vector<8x32xf32>
    %157 = arith.mulf %156, %155 : vector<8x32xf32>
    %cst_34 = arith.constant 1.000000e+00 : f32
    %158 = vector.broadcast %cst_34 : f32 to vector<8x32xf32>
    %159 = arith.subf %157, %158 : vector<8x32xf32>
    %160 = arith.mulf %153, %125 : vector<8x32xf32>
    %161 = arith.mulf %152, %159 : vector<8x32xf32>
    %162 = arith.addf %160, %161 : vector<8x32xf32>
    %163 = math.tanh %162 : vector<8x32xf32>
    %164 = arith.mulf %154, %163 : vector<8x32xf32>
    %165 = vector.extract_strided_slice %150 {offsets = [0, 128], sizes = [8, 128], strides = [1, 1]} : vector<8x256xf32> to vector<8x128xf32>
    %166 = vector.extract_strided_slice %165 {offsets = [0, 0], sizes = [8, 32], strides = [1, 1]} : vector<8x128xf32> to vector<8x32xf32>
    %167 = vector.extract_strided_slice %165 {offsets = [0, 32], sizes = [8, 32], strides = [1, 1]} : vector<8x128xf32> to vector<8x32xf32>
    %168 = vector.extract_strided_slice %165 {offsets = [0, 64], sizes = [8, 32], strides = [1, 1]} : vector<8x128xf32> to vector<8x32xf32>
    %169 = vector.extract_strided_slice %165 {offsets = [0, 96], sizes = [8, 32], strides = [1, 1]} : vector<8x128xf32> to vector<8x32xf32>
    %cst_35 = arith.constant 2.000000e+00 : f32
    %170 = vector.broadcast %cst_35 : f32 to vector<8x32xf32>
    %171 = arith.mulf %170, %169 : vector<8x32xf32>
    %cst_36 = arith.constant 1.000000e+00 : f32
    %172 = vector.broadcast %cst_36 : f32 to vector<8x32xf32>
    %173 = arith.subf %171, %172 : vector<8x32xf32>
    %174 = arith.mulf %167, %139 : vector<8x32xf32>
    %175 = arith.mulf %166, %173 : vector<8x32xf32>
    %176 = arith.addf %174, %175 : vector<8x32xf32>
    %177 = math.tanh %176 : vector<8x32xf32>
    %178 = arith.mulf %168, %177 : vector<8x32xf32>
    %179 = tpu.concatenate %164, %178 in 1 : vector<8x32xf32>, vector<8x32xf32> -> vector<8x64xf32>
    %cst_37 = arith.constant dense<0.000000e+00> : vector<8x256xf32>
    %180 = tpu.matmul %179, %10, %cst_37 {dimension_numbers = #tpu.dot_dimension_numbers<[1], [0], [0], [1], [0, 0, 1, 1], [], []>} : vector<8x64xf32>, vector<64x256xf32>, vector<8x256xf32> -> vector<8x256xf32>
    %181 = vector.extract_strided_slice %9 {offsets = [40, 0], sizes = [8, 256], strides = [1, 1]} : vector<64x256xf32> to vector<8x256xf32>
    %182 = arith.addf %180, %181 : vector<8x256xf32>
    %183 = arith.negf %182 : vector<8x256xf32>
    %184 = math.exp %183 : vector<8x256xf32>
    %cst_38 = arith.constant 1.000000e+00 : f32
    %185 = vector.broadcast %cst_38 : f32 to vector<8x256xf32>
    %186 = arith.addf %185, %184 : vector<8x256xf32>
    %187 = arith.divf %185, %186 : vector<8x256xf32>
    %188 = vector.extract_strided_slice %187 {offsets = [0, 0], sizes = [8, 128], strides = [1, 1]} : vector<8x256xf32> to vector<8x128xf32>
    %189 = vector.extract_strided_slice %188 {offsets = [0, 0], sizes = [8, 32], strides = [1, 1]} : vector<8x128xf32> to vector<8x32xf32>
    %190 = vector.extract_strided_slice %188 {offsets = [0, 32], sizes = [8, 32], strides = [1, 1]} : vector<8x128xf32> to vector<8x32xf32>
    %191 = vector.extract_strided_slice %188 {offsets = [0, 64], sizes = [8, 32], strides = [1, 1]} : vector<8x128xf32> to vector<8x32xf32>
    %192 = vector.extract_strided_slice %188 {offsets = [0, 96], sizes = [8, 32], strides = [1, 1]} : vector<8x128xf32> to vector<8x32xf32>
    %cst_39 = arith.constant 2.000000e+00 : f32
    %193 = vector.broadcast %cst_39 : f32 to vector<8x32xf32>
    %194 = arith.mulf %193, %192 : vector<8x32xf32>
    %cst_40 = arith.constant 1.000000e+00 : f32
    %195 = vector.broadcast %cst_40 : f32 to vector<8x32xf32>
    %196 = arith.subf %194, %195 : vector<8x32xf32>
    %197 = arith.mulf %190, %162 : vector<8x32xf32>
    %198 = arith.mulf %189, %196 : vector<8x32xf32>
    %199 = arith.addf %197, %198 : vector<8x32xf32>
    %200 = math.tanh %199 : vector<8x32xf32>
    %201 = arith.mulf %191, %200 : vector<8x32xf32>
    %202 = vector.extract_strided_slice %187 {offsets = [0, 128], sizes = [8, 128], strides = [1, 1]} : vector<8x256xf32> to vector<8x128xf32>
    %203 = vector.extract_strided_slice %202 {offsets = [0, 0], sizes = [8, 32], strides = [1, 1]} : vector<8x128xf32> to vector<8x32xf32>
    %204 = vector.extract_strided_slice %202 {offsets = [0, 32], sizes = [8, 32], strides = [1, 1]} : vector<8x128xf32> to vector<8x32xf32>
    %205 = vector.extract_strided_slice %202 {offsets = [0, 64], sizes = [8, 32], strides = [1, 1]} : vector<8x128xf32> to vector<8x32xf32>
    %206 = vector.extract_strided_slice %202 {offsets = [0, 96], sizes = [8, 32], strides = [1, 1]} : vector<8x128xf32> to vector<8x32xf32>
    %cst_41 = arith.constant 2.000000e+00 : f32
    %207 = vector.broadcast %cst_41 : f32 to vector<8x32xf32>
    %208 = arith.mulf %207, %206 : vector<8x32xf32>
    %cst_42 = arith.constant 1.000000e+00 : f32
    %209 = vector.broadcast %cst_42 : f32 to vector<8x32xf32>
    %210 = arith.subf %208, %209 : vector<8x32xf32>
    %211 = arith.mulf %204, %176 : vector<8x32xf32>
    %212 = arith.mulf %203, %210 : vector<8x32xf32>
    %213 = arith.addf %211, %212 : vector<8x32xf32>
    %214 = math.tanh %213 : vector<8x32xf32>
    %215 = arith.mulf %205, %214 : vector<8x32xf32>
    %216 = tpu.concatenate %201, %215 in 1 : vector<8x32xf32>, vector<8x32xf32> -> vector<8x64xf32>
    %cst_43 = arith.constant dense<0.000000e+00> : vector<8x256xf32>
    %217 = tpu.matmul %216, %10, %cst_43 {dimension_numbers = #tpu.dot_dimension_numbers<[1], [0], [0], [1], [0, 0, 1, 1], [], []>} : vector<8x64xf32>, vector<64x256xf32>, vector<8x256xf32> -> vector<8x256xf32>
    %218 = vector.extract_strided_slice %9 {offsets = [48, 0], sizes = [8, 256], strides = [1, 1]} : vector<64x256xf32> to vector<8x256xf32>
    %219 = arith.addf %217, %218 : vector<8x256xf32>
    %220 = arith.negf %219 : vector<8x256xf32>
    %221 = math.exp %220 : vector<8x256xf32>
    %cst_44 = arith.constant 1.000000e+00 : f32
    %222 = vector.broadcast %cst_44 : f32 to vector<8x256xf32>
    %223 = arith.addf %222, %221 : vector<8x256xf32>
    %224 = arith.divf %222, %223 : vector<8x256xf32>
    %225 = vector.extract_strided_slice %224 {offsets = [0, 0], sizes = [8, 128], strides = [1, 1]} : vector<8x256xf32> to vector<8x128xf32>
    %226 = vector.extract_strided_slice %225 {offsets = [0, 0], sizes = [8, 32], strides = [1, 1]} : vector<8x128xf32> to vector<8x32xf32>
    %227 = vector.extract_strided_slice %225 {offsets = [0, 32], sizes = [8, 32], strides = [1, 1]} : vector<8x128xf32> to vector<8x32xf32>
    %228 = vector.extract_strided_slice %225 {offsets = [0, 64], sizes = [8, 32], strides = [1, 1]} : vector<8x128xf32> to vector<8x32xf32>
    %229 = vector.extract_strided_slice %225 {offsets = [0, 96], sizes = [8, 32], strides = [1, 1]} : vector<8x128xf32> to vector<8x32xf32>
    %cst_45 = arith.constant 2.000000e+00 : f32
    %230 = vector.broadcast %cst_45 : f32 to vector<8x32xf32>
    %231 = arith.mulf %230, %229 : vector<8x32xf32>
    %cst_46 = arith.constant 1.000000e+00 : f32
    %232 = vector.broadcast %cst_46 : f32 to vector<8x32xf32>
    %233 = arith.subf %231, %232 : vector<8x32xf32>
    %234 = arith.mulf %227, %199 : vector<8x32xf32>
    %235 = arith.mulf %226, %233 : vector<8x32xf32>
    %236 = arith.addf %234, %235 : vector<8x32xf32>
    %237 = math.tanh %236 : vector<8x32xf32>
    %238 = arith.mulf %228, %237 : vector<8x32xf32>
    %239 = vector.extract_strided_slice %224 {offsets = [0, 128], sizes = [8, 128], strides = [1, 1]} : vector<8x256xf32> to vector<8x128xf32>
    %240 = vector.extract_strided_slice %239 {offsets = [0, 0], sizes = [8, 32], strides = [1, 1]} : vector<8x128xf32> to vector<8x32xf32>
    %241 = vector.extract_strided_slice %239 {offsets = [0, 32], sizes = [8, 32], strides = [1, 1]} : vector<8x128xf32> to vector<8x32xf32>
    %242 = vector.extract_strided_slice %239 {offsets = [0, 64], sizes = [8, 32], strides = [1, 1]} : vector<8x128xf32> to vector<8x32xf32>
    %243 = vector.extract_strided_slice %239 {offsets = [0, 96], sizes = [8, 32], strides = [1, 1]} : vector<8x128xf32> to vector<8x32xf32>
    %cst_47 = arith.constant 2.000000e+00 : f32
    %244 = vector.broadcast %cst_47 : f32 to vector<8x32xf32>
    %245 = arith.mulf %244, %243 : vector<8x32xf32>
    %cst_48 = arith.constant 1.000000e+00 : f32
    %246 = vector.broadcast %cst_48 : f32 to vector<8x32xf32>
    %247 = arith.subf %245, %246 : vector<8x32xf32>
    %248 = arith.mulf %241, %213 : vector<8x32xf32>
    %249 = arith.mulf %240, %247 : vector<8x32xf32>
    %250 = arith.addf %248, %249 : vector<8x32xf32>
    %251 = math.tanh %250 : vector<8x32xf32>
    %252 = arith.mulf %242, %251 : vector<8x32xf32>
    %253 = tpu.concatenate %238, %252 in 1 : vector<8x32xf32>, vector<8x32xf32> -> vector<8x64xf32>
    %cst_49 = arith.constant dense<0.000000e+00> : vector<8x256xf32>
    %254 = tpu.matmul %253, %10, %cst_49 {dimension_numbers = #tpu.dot_dimension_numbers<[1], [0], [0], [1], [0, 0, 1, 1], [], []>} : vector<8x64xf32>, vector<64x256xf32>, vector<8x256xf32> -> vector<8x256xf32>
    %255 = vector.extract_strided_slice %9 {offsets = [56, 0], sizes = [8, 256], strides = [1, 1]} : vector<64x256xf32> to vector<8x256xf32>
    %256 = arith.addf %254, %255 : vector<8x256xf32>
    %257 = arith.negf %256 : vector<8x256xf32>
    %258 = math.exp %257 : vector<8x256xf32>
    %cst_50 = arith.constant 1.000000e+00 : f32
    %259 = vector.broadcast %cst_50 : f32 to vector<8x256xf32>
    %260 = arith.addf %259, %258 : vector<8x256xf32>
    %261 = arith.divf %259, %260 : vector<8x256xf32>
    %262 = vector.extract_strided_slice %261 {offsets = [0, 0], sizes = [8, 128], strides = [1, 1]} : vector<8x256xf32> to vector<8x128xf32>
    %263 = vector.extract_strided_slice %262 {offsets = [0, 0], sizes = [8, 32], strides = [1, 1]} : vector<8x128xf32> to vector<8x32xf32>
    %264 = vector.extract_strided_slice %262 {offsets = [0, 32], sizes = [8, 32], strides = [1, 1]} : vector<8x128xf32> to vector<8x32xf32>
    %265 = vector.extract_strided_slice %262 {offsets = [0, 64], sizes = [8, 32], strides = [1, 1]} : vector<8x128xf32> to vector<8x32xf32>
    %266 = vector.extract_strided_slice %262 {offsets = [0, 96], sizes = [8, 32], strides = [1, 1]} : vector<8x128xf32> to vector<8x32xf32>
    %cst_51 = arith.constant 2.000000e+00 : f32
    %267 = vector.broadcast %cst_51 : f32 to vector<8x32xf32>
    %268 = arith.mulf %267, %266 : vector<8x32xf32>
    %cst_52 = arith.constant 1.000000e+00 : f32
    %269 = vector.broadcast %cst_52 : f32 to vector<8x32xf32>
    %270 = arith.subf %268, %269 : vector<8x32xf32>
    %271 = arith.mulf %264, %236 : vector<8x32xf32>
    %272 = arith.mulf %263, %270 : vector<8x32xf32>
    %273 = arith.addf %271, %272 : vector<8x32xf32>
    %274 = math.tanh %273 : vector<8x32xf32>
    %275 = arith.mulf %265, %274 : vector<8x32xf32>
    %276 = vector.extract_strided_slice %261 {offsets = [0, 128], sizes = [8, 128], strides = [1, 1]} : vector<8x256xf32> to vector<8x128xf32>
    %277 = vector.extract_strided_slice %276 {offsets = [0, 0], sizes = [8, 32], strides = [1, 1]} : vector<8x128xf32> to vector<8x32xf32>
    %278 = vector.extract_strided_slice %276 {offsets = [0, 32], sizes = [8, 32], strides = [1, 1]} : vector<8x128xf32> to vector<8x32xf32>
    %279 = vector.extract_strided_slice %276 {offsets = [0, 64], sizes = [8, 32], strides = [1, 1]} : vector<8x128xf32> to vector<8x32xf32>
    %280 = vector.extract_strided_slice %276 {offsets = [0, 96], sizes = [8, 32], strides = [1, 1]} : vector<8x128xf32> to vector<8x32xf32>
    %cst_53 = arith.constant 2.000000e+00 : f32
    %281 = vector.broadcast %cst_53 : f32 to vector<8x32xf32>
    %282 = arith.mulf %281, %280 : vector<8x32xf32>
    %cst_54 = arith.constant 1.000000e+00 : f32
    %283 = vector.broadcast %cst_54 : f32 to vector<8x32xf32>
    %284 = arith.subf %282, %283 : vector<8x32xf32>
    %285 = arith.mulf %278, %250 : vector<8x32xf32>
    %286 = arith.mulf %277, %284 : vector<8x32xf32>
    %287 = arith.addf %285, %286 : vector<8x32xf32>
    %288 = math.tanh %287 : vector<8x32xf32>
    %289 = arith.mulf %279, %288 : vector<8x32xf32>
    %290 = tpu.concatenate %275, %289 in 1 : vector<8x32xf32>, vector<8x32xf32> -> vector<8x64xf32>
    %cst_55 = arith.constant dense<0.000000e+00> : vector<8x256xf32>
    %291 = tpu.matmul %290, %10, %cst_55 {dimension_numbers = #tpu.dot_dimension_numbers<[1], [0], [0], [1], [0, 0, 1, 1], [], []>} : vector<8x64xf32>, vector<64x256xf32>, vector<8x256xf32> -> vector<8x256xf32>
    %292 = vector.extract_strided_slice %291 {offsets = [0, 128], sizes = [8, 128], strides = [1, 1]} : vector<8x256xf32> to vector<8x128xf32>
    %293 = vector.broadcast %6 : vector<1x128xf32> to vector<8x128xf32>
    %294 = arith.addf %292, %293 : vector<8x128xf32>
    %295 = arith.negf %294 : vector<8x128xf32>
    %296 = math.exp %295 : vector<8x128xf32>
    %cst_56 = arith.constant 1.000000e+00 : f32
    %297 = vector.broadcast %cst_56 : f32 to vector<8x128xf32>
    %298 = arith.addf %297, %296 : vector<8x128xf32>
    %299 = arith.divf %297, %298 : vector<8x128xf32>
    %300 = vector.extract_strided_slice %299 {offsets = [0, 0], sizes = [8, 32], strides = [1, 1]} : vector<8x128xf32> to vector<8x32xf32>
    %301 = vector.extract_strided_slice %299 {offsets = [0, 32], sizes = [8, 32], strides = [1, 1]} : vector<8x128xf32> to vector<8x32xf32>
    %302 = vector.extract_strided_slice %299 {offsets = [0, 64], sizes = [8, 32], strides = [1, 1]} : vector<8x128xf32> to vector<8x32xf32>
    %303 = vector.extract_strided_slice %299 {offsets = [0, 96], sizes = [8, 32], strides = [1, 1]} : vector<8x128xf32> to vector<8x32xf32>
    %cst_57 = arith.constant 2.000000e+00 : f32
    %304 = vector.broadcast %cst_57 : f32 to vector<8x32xf32>
    %305 = arith.mulf %304, %303 : vector<8x32xf32>
    %cst_58 = arith.constant 1.000000e+00 : f32
    %306 = vector.broadcast %cst_58 : f32 to vector<8x32xf32>
    %307 = arith.subf %305, %306 : vector<8x32xf32>
    %308 = arith.mulf %301, %287 : vector<8x32xf32>
    %309 = arith.mulf %300, %307 : vector<8x32xf32>
    %310 = arith.addf %308, %309 : vector<8x32xf32>
    %311 = math.tanh %310 : vector<8x32xf32>
    %312 = arith.mulf %302, %311 : vector<8x32xf32>
    %313 = tpu.concatenate %275, %312 in 0 : vector<8x32xf32>, vector<8x32xf32> -> vector<16x32xf32>
    %cst_59 = arith.constant 0.000000e+00 : f32
    %314 = vector.broadcast %cst_59 : f32 to vector<16x32xf32>
    %315 = arith.maximumf %313, %314 : vector<16x32xf32>
    %c0_60 = arith.constant 0 : index
    %c0_61 = arith.constant 0 : index
    %316 = vector.load %arg5[%c0_60, %c0_61] : memref<32x128xf32, #tpu.memory_space<vmem>>, vector<32x128xf32>
    %cst_62 = arith.constant dense<0.000000e+00> : vector<16x128xf32>
    %317 = tpu.matmul %315, %316, %cst_62 {dimension_numbers = #tpu.dot_dimension_numbers<[1], [0], [0], [1], [0, 0, 1, 1], [], []>} : vector<16x32xf32>, vector<32x128xf32>, vector<16x128xf32> -> vector<16x128xf32>
    %c0_63 = arith.constant 0 : index
    %c0_64 = arith.constant 0 : index
    %318 = vector.load %arg6[%c0_63, %c0_64] : memref<1x128xf32, #tpu.memory_space<vmem>>, vector<1x128xf32>
    %319 = vector.broadcast %318 : vector<1x128xf32> to vector<16x128xf32>
    %320 = arith.addf %317, %319 : vector<16x128xf32>
    %cst_65 = arith.constant 0.000000e+00 : f32
    %321 = vector.broadcast %cst_65 : f32 to vector<16x128xf32>
    %322 = arith.maximumf %320, %321 : vector<16x128xf32>
    %c0_66 = arith.constant 0 : index
    %c0_67 = arith.constant 0 : index
    %323 = vector.load %arg7[%c0_66, %c0_67] : memref<1x128xf32, #tpu.memory_space<vmem>>, vector<1x128xf32>
    %324 = vector.broadcast %323 : vector<1x128xf32> to vector<16x128xf32>
    %325 = arith.mulf %322, %324 : vector<16x128xf32>
    %cst_68 = arith.constant dense<0.000000e+00> : vector<16xf32>
    %326 = vector.multi_reduction <add>, %325, %cst_68 [1] : vector<16x128xf32> to vector<16xf32>
    %327 = vector.shape_cast %326 : vector<16xf32> to vector<16x1xf32>
    %c0_69 = arith.constant 0 : index
    %c0_70 = arith.constant 0 : index
    %328 = vector.load %arg8[%c0_69, %c0_70] : memref<1x1xf32, #tpu.memory_space<vmem>>, vector<1x1xf32>
    %329 = vector.broadcast %328 : vector<1x1xf32> to vector<16x1xf32>
    %330 = arith.addf %327, %329 : vector<16x1xf32>
    %c0_71 = arith.constant 0 : index
    %c0_72 = arith.constant 0 : index
    %331 = vector.load %arg9[%c0_71, %c0_72] : memref<16x1xf32, #tpu.memory_space<vmem>>, vector<16x1xf32>
    tpu.vector_store %arg9[%c0_71, %c0_72], %330 {strides = array<i32>} : memref<16x1xf32, #tpu.memory_space<vmem>>, vector<16x1xf32>,
    return
  }
}

</mosaic_0001>

<bundles_post_ra>
// kernel: tpu_custom_call.1
= control target key start
LH: loop header
LB: loop body
LE: loop exit
PB: predicated region body
PF: predicated region fallthrough
CT: control target
= control target key end

     0   :  { %s1869_s0 = inlined_call_operand.vmem [shape: f32[64,4], index: 0, kind: input, shape index: {}]   ;;  %s1870_s1 = inlined_call_operand.vmem [shape: f32[4,128], index: 1, kind: input, shape index: {}]   ;;  %s1871_s2 = inlined_call_operand.vmem [shape: f32[1,128], index: 2, kind: input, shape index: {}]   ;;  %s1872_s3 = inlined_call_operand.hbm [shape: f32[64,256], index: 3, kind: input, shape index: {}]   ;;  %s1873_s4 = inlined_call_operand.vmem [shape: f32[1,128], index: 4, kind: input, shape index: {}]   ;;  %s1874_s5 = inlined_call_operand.vmem [shape: f32[32,128], index: 5, kind: input, shape index: {}]   ;;  %s1875_s6 = inlined_call_operand.vmem [shape: f32[1,128], index: 6, kind: input, shape index: {}]   ;;  %s1876_s7 = inlined_call_operand.vmem [shape: f32[1,128], index: 7, kind: input, shape index: {}]   ;;  %s1877_s8 = inlined_call_operand.<no memory space> [shape: f32[1,1], index: 8, kind: input, shape index: {}]   ;;  %s1878_s9 = inlined_call_operand.vmem [shape: f32[16,1], index: 9, kind: output, shape index: {}]  }
   0x1   :  { %v14_v0 = vstv %s1877_s8 }
   0x2   :  { %15 = vst [vmem:[#allocation2] sm:$0x1] %v14_v0 }
   0x3   :  { %16 = vsyncpa [#allocation4], 0  ;;  %s27_s13 = sshll.u32 %s1872_s3, 4  ;;  %s1418_s14 = smov [#allocation3]   ;;  %s28_s13 = int_to_ptr.hbm [resolvable:$true] %s27_s13 }
   0x4   :  { %s29_s15 = sshll.u32 %s1418_s14, 4  ;;  %s1419_s16 = smov 256   ;;  %s30_s15 = int_to_ptr.vmem [resolvable:$true] %s29_s15 }
   0x5   :  { %s1420_s17 = smov 16  }
   0x6   :  { %35 = dma.hbm_to_vmem [thread:$0]  %s28_s13, 2048, %s30_s15, [#allocation4], %s1419_s16, %s1419_s16, %s1420_s17  }
   0x7   :  { %1416 = dma.done.wait [#allocation4], 2048  }
   0x8   :  { %1417 = vsyncadd [#allocation4], 4294965248  ;;  %vm88_vm0 = vcmask 1043456   ;;  %vm63_vm1 = vcmask 31744   ;;  %v58_v1 = vld [vmem:[%s1870_s1] sm:$0xf] }
   0x9   :  { %v50_v2 = vld [vmem:[%s1869_s0] sm:$0xff]  ;;  %1225 = vmatpush.msk.msra.mxu0 %vm88_vm0, %v58_v1  ;;  %s1421_s1 = smov 32   ;;  %v1499_v27 = vld [vmem:[#allocation3 + $0x70] sm:$0xff]  ;;  %v1507_v30 = vld [vmem:[#allocation3 + $0x68] sm:$0xff]  ;;  %s1422_s24 = smov 64   ;;  %vm195_vm6 = vcmask 261120  }
   0xa   :  { %1226 = vmatmul.msk.f32.vlgmr.msra.gmra.mxu0 %vm63_vm1, %v50_v2  ;;  %v1490_v3 = vld [vmem:[%s1871_s2] ss:$0 sm:$0xff]  ;;  %v1503_v29 = vld [vmem:[#allocation3 + $0x60] sm:$0xff]  ;;  %209 = vmatpush.msra.mxu1 %v1499_v27  ;;  %v1509_v31 = vld [vmem:[#allocation3 + $0x50] sm:$0xff]  ;;  %vm197_vm7 = vcmask 523264   ;;  %s1423_s27 = smov 96  }
   0xb   :  { %v1501_v28 = vld [vmem:[#allocation3 + $0x78] sm:$0xff]  ;;  %337 = vmatpush.msra.mxu3 %v1499_v27  ;;  %977 = vmatpush.msrb.mxu0 %v1499_v27  ;;  %v1517_v33 = vld [vmem:[#allocation3 + $0x40] sm:$0xff]  ;;  %v1519_v34 = vld [vmem:[#allocation3 + $0x48] sm:$0xff] }
   0xc   :  { %229 = vmatpush.msra.mxu2 %v1501_v28  ;;  %v1511_v32 = vld [vmem:[#allocation3 + $0x58] sm:$0xff]  ;;  %210 = vmatpush.msra.mxu1 %v1503_v29  ;;  %v51_v35 = vld [vmem:[%s1869_s0 + $0x8] sm:$0xff]  ;;  %v1528_v36 = vld [vmem:[#allocation3 + $0x30] sm:$0xff] }
   0xd   :  { %338 = vmatpush.msra.mxu3 %v1503_v29  ;;  %978 = vmatpush.msrb.mxu0 %v1503_v29  ;;  %v1530_v37 = vld [vmem:[#allocation3 + $0x38] sm:$0xff]  ;;  %v1536_v38 = vld [vmem:[#allocation3 + $0x20] sm:$0xff]  ;;  %v1538_v39 = vld [vmem:[#allocation3 + $0x28] sm:$0xff] }
   0xe   :  { %230 = vmatpush.msra.mxu2 %v1507_v30  ;;  %211 = vmatpush.msra.mxu1 %v1509_v31  ;;  %v1544_v40 = vld [vmem:[#allocation3 + $0x10] sm:$0xff]  ;;  %v1546_v41 = vld [vmem:[#allocation3 + $0x18] sm:$0xff]  ;;  %v1560_v44 = vld [vmem:[#allocation3] sm:$0xff] }
   0xf   :  { %339 = vmatpush.msra.mxu3 %v1509_v31  ;;  %979 = vmatpush.msrb.mxu0 %v1509_v31  ;;  %v1562_v45 = vld [vmem:[#allocation3 + $0x8] sm:$0xff]  ;;  %v1615_v53 = vld [vmem:[%s1873_s4] ss:$0 sm:$0xff] }
  0x10   :  { %231 = vmatpush.msra.mxu2 %v1511_v32  ;;  %212 = vmatpush.msra.mxu1 %v1517_v33 }
  0x11   :  { %340 = vmatpush.msra.mxu3 %v1517_v33  ;;  %980 = vmatpush.msrb.mxu0 %v1517_v33 }
  0x12   :  { %1227 = vmatmul.msk.f32.gmra.mxu0 %vm63_vm1, %v51_v35  ;;  %232 = vmatpush.msra.mxu2 %v1519_v34 }
  0x13   :  { %213 = vmatpush.msra.mxu1 %v1528_v36  ;;  %341 = vmatpush.msra.mxu3 %v1528_v36 }
  0x14   :  { %233 = vmatpush.msra.mxu2 %v1530_v37  ;;  %981 = vmatpush.msrb.mxu0 %v1528_v36 }
  0x15   :  { %214 = vmatpush.msra.mxu1 %v1536_v38  ;;  %342 = vmatpush.msra.mxu3 %v1536_v38 }
  0x16   :  { %234 = vmatpush.msra.mxu2 %v1538_v39  ;;  %982 = vmatpush.msrb.mxu0 %v1536_v38 }
  0x17   :  { %215 = vmatpush.msra.mxu1 %v1544_v40  ;;  %343 = vmatpush.msra.mxu3 %v1544_v40 }
  0x18   :  { %235 = vmatpush.msra.mxu2 %v1546_v41  ;;  %983 = vmatpush.msrb.mxu0 %v1544_v40 }
  0x19   :  { %216 = vmatpush.msra.mxu1 %v1560_v44  ;;  %344 = vmatpush.msra.mxu3 %v1560_v44 }
  0x1a   :  { %236 = vmatpush.msra.mxu2 %v1562_v45  ;;  %984 = vmatpush.msrb.mxu0 %v1560_v44 }
  0x1b   :  { %357 = vmatpush.msrb.mxu1 %v1501_v28  ;;  %485 = vmatpush.msrb.mxu3 %v1501_v28 }
  0x1c   :  { %465 = vmatpush.msrb.mxu2 %v1499_v27 }
  0x1d   :  { %358 = vmatpush.msrb.mxu1 %v1507_v30  ;;  %486 = vmatpush.msrb.mxu3 %v1507_v30 }
  0x1e   :  { %466 = vmatpush.msrb.mxu2 %v1503_v29 }
  0x1f   :  { %359 = vmatpush.msrb.mxu1 %v1511_v32  ;;  %487 = vmatpush.msrb.mxu3 %v1511_v32 }
  0x20   :  { %467 = vmatpush.msrb.mxu2 %v1509_v31 }
  0x21   :  { %360 = vmatpush.msrb.mxu1 %v1519_v34  ;;  %488 = vmatpush.msrb.mxu3 %v1519_v34 }
  0x22   :  { %468 = vmatpush.msrb.mxu2 %v1517_v33 }
  0x23   :  { %361 = vmatpush.msrb.mxu1 %v1530_v37  ;;  %489 = vmatpush.msrb.mxu3 %v1530_v37 }
  0x24   :  { %469 = vmatpush.msrb.mxu2 %v1528_v36 }
  0x25   :  { %362 = vmatpush.msrb.mxu1 %v1538_v39  ;;  %490 = vmatpush.msrb.mxu3 %v1538_v39 }
  0x26   :  { %470 = vmatpush.msrb.mxu2 %v1536_v38 }
  0x27   :  { %363 = vmatpush.msrb.mxu1 %v1546_v41  ;;  %491 = vmatpush.msrb.mxu3 %v1546_v41 }
  0x28   :  { %471 = vmatpush.msrb.mxu2 %v1544_v40 }
  0x29   :  { %364 = vmatpush.msrb.mxu1 %v1562_v45  ;;  %492 = vmatpush.msrb.mxu3 %v1562_v45 }
  0x2a   :  { %472 = vmatpush.msrb.mxu2 %v1560_v44 }
  0x87   :  { %v109_v4 = vpop.f32.mrf.mxu0 }
  0x88   :  { %v110_v5 = vadd.f32 %v1490_v3, %v109_v4 }
  0x8a   :  { %v1234_v6 = vmul.f32 -1.442695, %v110_v5 }
  0x8c   :  { %1294 = vpow2.f32 %v1234_v6 }
  0x8f   :  { %v112_v48 = vpop.f32.mrf.mxu0 }
  0x90   :  { %v113_v49 = vadd.f32 %v1490_v3, %v112_v48 }
  0x92   :  { %v1295_v7 = vpop.eup %1294 }
  0x93   :  { %v156_v8 = vadd.f32 1.0, %v1295_v7 }
  0x95   :  { %1296 = vrcp.f32 %v156_v8  ;;  %v168_v12 = vand.u32 2147483648, %v156_v8  ;;  %v166_v14 = vand.u32 2147483647, %v156_v8  ;;  %vm162_vm3 = vweird.f32 %v156_v8 }
  0x97   :  { %v169_v16 = vor.u32 1.1754944e-38, %v168_v12  ;;  %vm167_vm5 = vcmp.eq.f32.partialorder %v166_v14, 8.507059e+37 }
  0x9b   :  { %v1297_v9 = vpop.eup %1296 }
  0x9c   :  { %v158_v10 = vmul.f32 %v1297_v9, %v156_v8  ;;  %vm163_vm2 = vweird.f32 %v1297_v9 }
  0x9d   :  { %vm164_vm4 = vmor %vm162_vm3, %vm163_vm2 }
  0x9e   :  { %v159_v11 = vsub.f32 1.0, %v158_v10 }
  0xa0   :  { %v160_v13 = vmul.f32 %v1297_v9, %v159_v11 }
  0xa2   :  { %v161_v15 = vadd.f32 %v1297_v9, %v160_v13 }
  0xa4   :  { %v165_v17 = vsel %vm164_vm4, %v1297_v9, %v161_v15 }
  0xa5   :  { %v170_v18 = vsel %vm167_vm5, %v169_v16, %v165_v17 }
  0xa6   :  { %v172_v19 = vmul.f32 2.0, %v170_v18  ;;  %v174_v23 = vmul.f32 0.0, %v170_v18 }
  0xa8   :  { %v1235_v20 = vadd.f32 -1.0, %v172_v19 }
  0xaa   :  { %176 = vrot.lane.b32.xlu0 %v1235_v20, %s1421_s1 }
 0x11c   :  { %v177_v21 = vpop.permute.xlu0 %176 }
 0x11d   :  { %v179_v22 = vmul.f32 %v177_v21, %v170_v18 }
 0x11f   :  { %181 = vrot.lane.b32.xlu0 %v179_v22, %s1421_s1 }
 0x191   :  { %v182_v24 = vpop.permute.xlu0 %181 }
 0x192   :  { %v1495_v25 = vadd.f32 %v182_v24, %v174_v23 }
 0x194   :  { %1298 = vtanh.f32 %v1495_v25 }
 0x19a   :  { %v1299_v26 = vpop.eup %1298 }
 0x19b   :  { %187 = vrot.lane.b32.xlu1 %v1299_v26, %s1421_s1 }
 0x20d   :  { %v188_v42 = vpop.permute.xlu1 %187 }
 0x20e   :  { %v190_v43 = vmul.f32 %v188_v42, %v170_v18 }
 0x210   :  { %192 = vrot.lane.b32.xlu1 %v190_v43, %s1422_s24 }
 0x282   :  { %v193_v46 = vpop.permute.xlu1 %192 }
 0x283   :  { %v196_v47 = vsel %vm195_vm6, %v193_v46, 0.0 }
 0x284   :  { %1236 = vmatmul.msk.f32.vlgmr.msra.gmra.mxu1 %vm197_vm7, %v196_v47  ;;  %1237 = vmatmul.msk.f32.vlgmr.msra.gmra.mxu2 %vm197_vm7, %v196_v47 }
 0x285   :  { %593 = vmatpush.msra.mxu1 %v1499_v27  ;;  %613 = vmatpush.msra.mxu2 %v1501_v28 }
 0x287   :  { %594 = vmatpush.msra.mxu1 %v1503_v29  ;;  %614 = vmatpush.msra.mxu2 %v1507_v30 }
 0x289   :  { %595 = vmatpush.msra.mxu1 %v1509_v31  ;;  %615 = vmatpush.msra.mxu2 %v1511_v32 }
 0x28b   :  { %596 = vmatpush.msra.mxu1 %v1517_v33  ;;  %616 = vmatpush.msra.mxu2 %v1519_v34 }
 0x28d   :  { %597 = vmatpush.msra.mxu1 %v1528_v36  ;;  %617 = vmatpush.msra.mxu2 %v1530_v37 }
 0x28f   :  { %598 = vmatpush.msra.mxu1 %v1536_v38  ;;  %618 = vmatpush.msra.mxu2 %v1538_v39 }
 0x291   :  { %599 = vmatpush.msra.mxu1 %v1544_v40  ;;  %619 = vmatpush.msra.mxu2 %v1546_v41 }
 0x293   :  { %600 = vmatpush.msra.mxu1 %v1560_v44  ;;  %620 = vmatpush.msra.mxu2 %v1562_v45 }
 0x301   :  { %v218_v50 = vpop.f32.mrf.mxu1 }
 0x302   :  { %v219_v51 = vadd.f32 %v218_v50, %v113_v49 }
 0x304   :  { %v1238_v52 = vmul.f32 -1.442695, %v219_v51 }
 0x306   :  { %1300 = vpow2.f32 %v1238_v52 }
 0x307   :  { %v238_v54 = vpop.f32.mrf.mxu2 }
 0x308   :  { %v239_v55 = vadd.f32 %v1615_v53, %v238_v54 }
 0x30a   :  { %v1239_v56 = vmul.f32 -1.442695, %v239_v55  ;;  %v52_v55 = vld [vmem:[%s1869_s0 + $0x10] sm:$0xff] }
 0x30b   :  { %1228 = vmatmul.msk.f32.gmra.mxu0 %vm63_vm1, %v52_v55 }
 0x30c   :  { %v1301_v57 = vpop.eup %1300  ;;  %1302 = vpow2.f32 %v1239_v56 }
 0x30d   :  { %v247_v58 = vadd.f32 1.0, %v1301_v57 }
 0x30f   :  { %1304 = vrcp.f32 %v247_v58  ;;  %v260_v0 = vand.u32 2147483648, %v247_v58  ;;  %v258_v2 = vand.u32 2147483647, %v247_v58  ;;  %vm254_vm9 = vweird.f32 %v247_v58 }
 0x311   :  { %v261_v7 = vor.u32 1.1754944e-38, %v260_v0  ;;  %vm259_vm11 = vcmp.eq.f32.partialorder %v258_v2, 8.507059e+37 }
 0x312   :  { %v1303_v59 = vpop.eup %1302 }
 0x313   :  { %v248_v60 = vadd.f32 1.0, %v1303_v59 }
 0x315   :  { %v1305_v61 = vpop.eup %1304  ;;  %1306 = vrcp.f32 %v248_v60  ;;  %v275_v11 = vand.u32 2147483648, %v248_v60  ;;  %v273_v14 = vand.u32 2147483647, %v248_v60  ;;  %vm269_vm13 = vweird.f32 %v248_v60 }
 0x316   :  { %v250_v62 = vmul.f32 %v1305_v61, %v247_v58  ;;  %vm255_vm8 = vweird.f32 %v1305_v61 }
 0x317   :  { %vm256_vm10 = vmor %vm254_vm9, %vm255_vm8  ;;  %v276_v17 = vor.u32 1.1754944e-38, %v275_v11  ;;  %vm274_vm15 = vcmp.eq.f32.partialorder %v273_v14, 8.507059e+37 }
 0x318   :  { %v251_v63 = vsub.f32 1.0, %v250_v62 }
 0x31a   :  { %v252_v1 = vmul.f32 %v1305_v61, %v251_v63 }
 0x31b   :  { %v1307_v4 = vpop.eup %1306 }
 0x31c   :  { %v265_v5 = vmul.f32 %v1307_v4, %v248_v60  ;;  %v253_v6 = vadd.f32 %v1305_v61, %v252_v1  ;;  %vm270_vm12 = vweird.f32 %v1307_v4 }
 0x31d   :  { %vm271_vm14 = vmor %vm269_vm13, %vm270_vm12 }
 0x31e   :  { %v266_v8 = vsub.f32 1.0, %v265_v5  ;;  %v257_v9 = vsel %vm256_vm10, %v1305_v61, %v253_v6 }
 0x31f   :  { %v262_v10 = vsel %vm259_vm11, %v261_v7, %v257_v9 }
 0x320   :  { %v279_v12 = vmul.f32 2.0, %v262_v10  ;;  %v267_v13 = vmul.f32 %v1307_v4, %v266_v8  ;;  %v281_v35 = vmul.f32 %v262_v10, %v1495_v25 }
 0x322   :  { %v1240_v15 = vadd.f32 -1.0, %v279_v12  ;;  %v268_v16 = vadd.f32 %v1307_v4, %v267_v13 }
 0x324   :  { %283 = vrot.lane.b32.xlu2 %v1240_v15, %s1421_s1  ;;  %v272_v18 = vsel %vm271_vm14, %v1307_v4, %v268_v16 }
 0x325   :  { %v277_v19 = vsel %vm274_vm15, %v276_v17, %v272_v18 }
 0x326   :  { %v298_v20 = vmul.f32 2.0, %v277_v19  ;;  %v300_v46 = vmul.f32 0.0, %v277_v19 }
 0x328   :  { %v1241_v21 = vadd.f32 -1.0, %v298_v20 }
 0x32c   :  { %302 = vrot.lane.b32.xlu2 %v1241_v21, %s1421_s1 }
 0x37e   :  { %v284_v22 = vpop.permute.xlu2 %283 }
 0x37f   :  { %v286_v23 = vmul.f32 %v284_v22, %v262_v10 }
 0x381   :  { %288 = vrot.lane.b32.xlu0 %v286_v23, %s1421_s1 }
 0x386   :  { %v303_v24 = vpop.permute.xlu2 %302 }
 0x387   :  { %v305_v26 = vmul.f32 %v303_v24, %v277_v19 }
 0x388   :  { %v115_v60 = vpop.f32.mrf.mxu0 }
 0x389   :  { %307 = vrot.lane.b32.xlu1 %v305_v26, %s1421_s1  ;;  %v116_v63 = vadd.f32 %v1490_v3, %v115_v60 }
 0x3f3   :  { %v289_v42 = vpop.permute.xlu0 %288 }
 0x3f4   :  { %v1623_v43 = vadd.f32 %v289_v42, %v281_v35 }
 0x3f6   :  { %1308 = vtanh.f32 %v1623_v43 }
 0x3fb   :  { %v308_v47 = vpop.permute.xlu1 %307 }
 0x3fc   :  { %v1309_v48 = vpop.eup %1308  ;;  %v1626_v49 = vadd.f32 %v308_v47, %v300_v46 }
 0x3fd   :  { %294 = vrot.lane.b32.xlu2 %v1309_v48, %s1421_s1 }
 0x3fe   :  { %1310 = vtanh.f32 %v1626_v49 }
 0x404   :  { %v1311_v50 = vpop.eup %1310 }
 0x405   :  { %313 = vrot.lane.b32.xlu0 %v1311_v50, %s1421_s1 }
 0x457   :  { %v295_v51 = vpop.permute.xlu2 %294 }
 0x458   :  { %v297_v52 = vmul.f32 %v295_v51, %v262_v10 }
 0x45a   :  { %318 = vrot.lane.b32.xlu1 %v297_v52, %s1422_s24 }
 0x477   :  { %v314_v25 = vpop.permute.xlu0 %313 }
 0x478   :  { %v316_v54 = vmul.f32 %v314_v25, %v277_v19 }
 0x47a   :  { %322 = vrot.lane.b32.xlu2 %v316_v54, %s1423_s27 }
 0x4cc   :  { %v319_v56 = vpop.permute.xlu1 %318 }
 0x4d4   :  { %v323_v57 = vpop.permute.xlu2 %322 }
 0x4d5   :  { %v325_v58 = vsel %vm195_vm6, %v319_v56, %v323_v57 }
 0x4d6   :  { %1242 = vmatmul.msk.f32.vlgmr.msra.gmra.mxu3 %vm197_vm7, %v325_v58  ;;  %1243 = vmatmul.msk.f32.vlgmr.msrb.gmra.mxu1 %vm197_vm7, %v325_v58 }
 0x4d7   :  { %721 = vmatpush.msra.mxu3 %v1499_v27  ;;  %741 = vmatpush.msrb.mxu1 %v1501_v28 }
 0x4d9   :  { %722 = vmatpush.msra.mxu3 %v1503_v29  ;;  %742 = vmatpush.msrb.mxu1 %v1507_v30 }
 0x4db   :  { %723 = vmatpush.msra.mxu3 %v1509_v31  ;;  %743 = vmatpush.msrb.mxu1 %v1511_v32 }
 0x4dd   :  { %724 = vmatpush.msra.mxu3 %v1517_v33  ;;  %744 = vmatpush.msrb.mxu1 %v1519_v34 }
 0x4df   :  { %725 = vmatpush.msra.mxu3 %v1528_v36  ;;  %745 = vmatpush.msrb.mxu1 %v1530_v37 }
 0x4e1   :  { %726 = vmatpush.msra.mxu3 %v1536_v38  ;;  %746 = vmatpush.msrb.mxu1 %v1538_v39 }
 0x4e3   :  { %727 = vmatpush.msra.mxu3 %v1544_v40  ;;  %747 = vmatpush.msrb.mxu1 %v1546_v41 }
 0x4e5   :  { %728 = vmatpush.msra.mxu3 %v1560_v44  ;;  %748 = vmatpush.msrb.mxu1 %v1562_v45 }
 0x553   :  { %v366_v59 = vpop.f32.mrf.mxu1 }
 0x554   :  { %v367_v61 = vadd.f32 %v1615_v53, %v366_v59 }
 0x556   :  { %v1245_v62 = vmul.f32 -1.442695, %v367_v61 }
 0x558   :  { %1312 = vpow2.f32 %v1245_v62 }
 0x559   :  { %v346_v0 = vpop.f32.mrf.mxu3 }
 0x55a   :  { %v347_v1 = vadd.f32 %v346_v0, %v116_v63 }
 0x55c   :  { %v1244_v2 = vmul.f32 -1.442695, %v347_v1 }
 0x55e   :  { %v1313_v4 = vpop.eup %1312  ;;  %1314 = vpow2.f32 %v1244_v2 }
 0x55f   :  { %v376_v5 = vadd.f32 1.0, %v1313_v4 }
 0x561   :  { %1316 = vrcp.f32 %v376_v5  ;;  %v403_v11 = vand.u32 2147483648, %v376_v5  ;;  %v401_v13 = vand.u32 2147483647, %v376_v5  ;;  %vm397_vm2 = vweird.f32 %v376_v5 }
 0x563   :  { %v404_v17 = vor.u32 1.1754944e-38, %v403_v11  ;;  %vm402_vm4 = vcmp.eq.f32.partialorder %v401_v13, 8.507059e+37 }
 0x564   :  { %v1315_v6 = vpop.eup %1314 }
 0x565   :  { %v375_v7 = vadd.f32 1.0, %v1315_v6 }
 0x567   :  { %v1317_v8 = vpop.eup %1316  ;;  %1318 = vrcp.f32 %v375_v7  ;;  %v388_v21 = vand.u32 2147483648, %v375_v7  ;;  %v386_v24 = vand.u32 2147483647, %v375_v7  ;;  %vm382_vm8 = vweird.f32 %v375_v7 }
 0x568   :  { %v393_v9 = vmul.f32 %v1317_v8, %v376_v5  ;;  %vm398_vm0 = vweird.f32 %v1317_v8 }
 0x569   :  { %vm399_vm3 = vmor %vm397_vm2, %vm398_vm0  ;;  %v389_v42 = vor.u32 1.1754944e-38, %v388_v21  ;;  %vm387_vm10 = vcmp.eq.f32.partialorder %v386_v24, 8.507059e+37 }
 0x56a   :  { %v394_v10 = vsub.f32 1.0, %v393_v9 }
 0x56c   :  { %v395_v12 = vmul.f32 %v1317_v8, %v394_v10 }
 0x56d   :  { %v1319_v14 = vpop.eup %1318 }
 0x56e   :  { %v378_v15 = vmul.f32 %v1319_v14, %v375_v7  ;;  %v396_v16 = vadd.f32 %v1317_v8, %v395_v12  ;;  %vm383_vm5 = vweird.f32 %v1319_v14 }
 0x56f   :  { %vm384_vm9 = vmor %vm382_vm8, %vm383_vm5 }
 0x570   :  { %v379_v18 = vsub.f32 1.0, %v378_v15  ;;  %v400_v19 = vsel %vm399_vm3, %v1317_v8, %v396_v16 }
 0x571   :  { %v405_v20 = vsel %vm402_vm4, %v404_v17, %v400_v19 }
 0x572   :  { %v426_v22 = vmul.f32 2.0, %v405_v20  ;;  %v380_v23 = vmul.f32 %v1319_v14, %v379_v18  ;;  %v428_v59 = vmul.f32 %v405_v20, %v1626_v49  ;;  %v53_v49 = vld [vmem:[%s1869_s0 + $0x18] sm:$0xff] }
 0x573   :  { %1229 = vmatmul.msk.f32.gmra.mxu0 %vm63_vm1, %v53_v49 }
 0x574   :  { %v1247_v26 = vadd.f32 -1.0, %v426_v22  ;;  %v381_v35 = vadd.f32 %v1319_v14, %v380_v23 }
 0x576   :  { %430 = vrot.lane.b32.xlu1 %v1247_v26, %s1421_s1  ;;  %v385_v46 = vsel %vm384_vm9, %v1319_v14, %v381_v35 }
 0x577   :  { %v390_v47 = vsel %vm387_vm10, %v389_v42, %v385_v46 }
 0x578   :  { %v407_v48 = vmul.f32 2.0, %v390_v47  ;;  %v409_v55 = vmul.f32 %v390_v47, %v1623_v43 }
 0x57a   :  { %v1246_v50 = vadd.f32 -1.0, %v407_v48 }
 0x57c   :  { %411 = vrot.lane.b32.xlu0 %v1246_v50, %s1421_s1 }
 0x5e8   :  { %v431_v51 = vpop.permute.xlu1 %430 }
 0x5e9   :  { %v433_v52 = vmul.f32 %v431_v51, %v405_v20 }
 0x5eb   :  { %435 = vrot.lane.b32.xlu0 %v433_v52, %s1421_s1 }
 0x5ee   :  { %v412_v25 = vpop.permute.xlu0 %411 }
 0x5ef   :  { %v414_v54 = vmul.f32 %v412_v25, %v390_v47 }
 0x5f1   :  { %416 = vrot.lane.b32.xlu2 %v414_v54, %s1421_s1 }
 0x64b   :  { %v417_v56 = vpop.permute.xlu2 %416 }
 0x64c   :  { %v1663_v57 = vadd.f32 %v417_v56, %v409_v55 }
 0x64e   :  { %1320 = vtanh.f32 %v1663_v57 }
 0x654   :  { %v1321_v58 = vpop.eup %1320 }
 0x655   :  { %422 = vrot.lane.b32.xlu1 %v1321_v58, %s1421_s1 }
 0x65d   :  { %v436_v60 = vpop.permute.xlu0 %435 }
 0x65e   :  { %v1668_v61 = vadd.f32 %v436_v60, %v428_v59 }
 0x660   :  { %1322 = vtanh.f32 %v1668_v61 }
 0x666   :  { %v1323_v62 = vpop.eup %1322 }
 0x667   :  { %441 = vrot.lane.b32.xlu2 %v1323_v62, %s1421_s1 }
 0x6c1   :  { %v442_v63 = vpop.permute.xlu2 %441 }
 0x6c2   :  { %v444_v43 = vmul.f32 %v442_v63, %v405_v20 }
 0x6c4   :  { %450 = vrot.lane.b32.xlu1 %v444_v43, %s1423_s27 }
 0x6c7   :  { %v423_v0 = vpop.permute.xlu1 %422 }
 0x6c8   :  { %v425_v1 = vmul.f32 %v423_v0, %v390_v47 }
 0x6ca   :  { %446 = vrot.lane.b32.xlu0 %v425_v1, %s1422_s24 }
 0x736   :  { %v451_v2 = vpop.permute.xlu1 %450 }
 0x73c   :  { %v447_v4 = vpop.permute.xlu0 %446 }
 0x73d   :  { %v453_v5 = vsel %vm195_vm6, %v447_v4, %v451_v2 }
 0x73e   :  { %1248 = vmatmul.msk.f32.vlgmr.msrb.gmra.mxu2 %vm197_vm7, %v453_v5  ;;  %1249 = vmatmul.msk.f32.vlgmr.msrb.gmra.mxu3 %vm197_vm7, %v453_v5 }
 0x73f   :  { %849 = vmatpush.msrb.mxu2 %v1499_v27  ;;  %869 = vmatpush.msrb.mxu3 %v1501_v28  ;;  %v118_v27 = vpop.f32.mrf.mxu0 }
 0x741   :  { %850 = vmatpush.msrb.mxu2 %v1503_v29  ;;  %870 = vmatpush.msrb.mxu3 %v1507_v30  ;;  %v119_v29 = vadd.f32 %v1490_v3, %v118_v27 }
 0x743   :  { %851 = vmatpush.msrb.mxu2 %v1509_v31  ;;  %871 = vmatpush.msrb.mxu3 %v1511_v32 }
 0x745   :  { %852 = vmatpush.msrb.mxu2 %v1517_v33  ;;  %872 = vmatpush.msrb.mxu3 %v1519_v34 }
 0x747   :  { %853 = vmatpush.msrb.mxu2 %v1528_v36  ;;  %873 = vmatpush.msrb.mxu3 %v1530_v37 }
 0x749   :  { %854 = vmatpush.msrb.mxu2 %v1536_v38  ;;  %874 = vmatpush.msrb.mxu3 %v1538_v39 }
 0x74b   :  { %855 = vmatpush.msrb.mxu2 %v1544_v40  ;;  %875 = vmatpush.msrb.mxu3 %v1546_v41 }
 0x74d   :  { %856 = vmatpush.msrb.mxu2 %v1560_v44  ;;  %876 = vmatpush.msrb.mxu3 %v1562_v45 }
 0x7c1   :  { %v474_v31 = vpop.f32.mrf.mxu2  ;;  %v494_v33 = vpop.f32.mrf.mxu3 }
 0x7c2   :  { %v475_v36 = vadd.f32 %v474_v31, %v119_v29  ;;  %v495_v6 = vadd.f32 %v1615_v53, %v494_v33 }
 0x7c4   :  { %v1250_v7 = vmul.f32 -1.442695, %v475_v36  ;;  %v1251_v38 = vmul.f32 -1.442695, %v495_v6 }
 0x7c6   :  { %1324 = vpow2.f32 %v1250_v7 }
 0x7c7   :  { %1326 = vpow2.f32 %v1251_v38 }
 0x7cc   :  { %v1325_v8 = vpop.eup %1324 }
 0x7cd   :  { %v1327_v40 = vpop.eup %1326  ;;  %v503_v9 = vadd.f32 1.0, %v1325_v8 }
 0x7ce   :  { %v504_v10 = vadd.f32 1.0, %v1327_v40 }
 0x7cf   :  { %1328 = vrcp.f32 %v503_v9  ;;  %v516_v16 = vand.u32 2147483648, %v503_v9  ;;  %v514_v19 = vand.u32 2147483647, %v503_v9  ;;  %vm510_vm13 = vweird.f32 %v503_v9 }
 0x7d0   :  { %1330 = vrcp.f32 %v504_v10  ;;  %v531_v17 = vand.u32 2147483648, %v504_v10  ;;  %v529_v21 = vand.u32 2147483647, %v504_v10  ;;  %vm525_vm14 = vweird.f32 %v504_v10 }
 0x7d1   :  { %v517_v24 = vor.u32 1.1754944e-38, %v516_v16  ;;  %vm515_vm2 = vcmp.eq.f32.partialorder %v514_v19, 8.507059e+37 }
 0x7d2   :  { %v532_v26 = vor.u32 1.1754944e-38, %v531_v17  ;;  %vm530_vm3 = vcmp.eq.f32.partialorder %v529_v21, 8.507059e+37 }
 0x7d5   :  { %v1329_v44 = vpop.eup %1328 }
 0x7d6   :  { %v1331_v11 = vpop.eup %1330  ;;  %v506_v12 = vmul.f32 %v1329_v44, %v503_v9  ;;  %vm511_vm11 = vweird.f32 %v1329_v44 }
 0x7d7   :  { %v521_v13 = vmul.f32 %v1331_v11, %v504_v10  ;;  %vm526_vm12 = vweird.f32 %v1331_v11  ;;  %vm512_vm15 = vmor %vm510_vm13, %vm511_vm11 }
 0x7d8   :  { %v507_v14 = vsub.f32 1.0, %v506_v12  ;;  %vm527_vm0 = vmor %vm525_vm14, %vm526_vm12 }
 0x7d9   :  { %v522_v15 = vsub.f32 1.0, %v521_v13 }
 0x7da   :  { %v508_v18 = vmul.f32 %v1329_v44, %v507_v14 }
 0x7db   :  { %v523_v20 = vmul.f32 %v1331_v11, %v522_v15 }
 0x7dc   :  { %v509_v22 = vadd.f32 %v1329_v44, %v508_v18 }
 0x7dd   :  { %v524_v23 = vadd.f32 %v1331_v11, %v523_v20 }
 0x7de   :  { %v513_v35 = vsel %vm512_vm15, %v1329_v44, %v509_v22 }
 0x7df   :  { %v528_v42 = vsel %vm527_vm0, %v1331_v11, %v524_v23  ;;  %v518_v46 = vsel %vm515_vm2, %v517_v24, %v513_v35 }
 0x7e0   :  { %v533_v47 = vsel %vm530_vm3, %v532_v26, %v528_v42  ;;  %v535_v48 = vmul.f32 2.0, %v518_v46  ;;  %v537_v58 = vmul.f32 %v518_v46, %v1663_v57 }
 0x7e1   :  { %v554_v50 = vmul.f32 2.0, %v533_v47  ;;  %v556_v60 = vmul.f32 %v533_v47, %v1668_v61  ;;  %v54_v61 = vld [vmem:[%s1869_s0 + $0x20] sm:$0xff] }
 0x7e2   :  { %v1252_v51 = vadd.f32 -1.0, %v535_v48  ;;  %1230 = vmatmul.msk.f32.gmra.mxu0 %vm63_vm1, %v54_v61 }
 0x7e3   :  { %v1253_v52 = vadd.f32 -1.0, %v554_v50 }
 0x7e4   :  { %539 = vrot.lane.b32.xlu2 %v1252_v51, %s1421_s1 }
 0x7e5   :  { %558 = vrot.lane.b32.xlu0 %v1253_v52, %s1421_s1 }
 0x83e   :  { %v540_v25 = vpop.permute.xlu2 %539 }
 0x83f   :  { %v542_v54 = vmul.f32 %v540_v25, %v518_v46 }
 0x841   :  { %544 = vrot.lane.b32.xlu1 %v542_v54, %s1421_s1 }
 0x857   :  { %v559_v55 = vpop.permute.xlu0 %558 }
 0x858   :  { %v561_v56 = vmul.f32 %v559_v55, %v533_v47 }
 0x85a   :  { %563 = vrot.lane.b32.xlu2 %v561_v56, %s1421_s1 }
 0x8b3   :  { %v545_v59 = vpop.permute.xlu1 %544 }
 0x8b4   :  { %v1705_v62 = vadd.f32 %v545_v59, %v537_v58  ;;  %v564_v63 = vpop.permute.xlu2 %563 }
 0x8b5   :  { %v1707_v43 = vadd.f32 %v564_v63, %v556_v60 }
 0x8b6   :  { %1332 = vtanh.f32 %v1705_v62 }
 0x8b7   :  { %1334 = vtanh.f32 %v1707_v43 }
 0x8bc   :  { %v1333_v0 = vpop.eup %1332 }
 0x8bd   :  { %v1335_v1 = vpop.eup %1334  ;;  %550 = vrot.lane.b32.xlu0 %v1333_v0, %s1421_s1 }
 0x8be   :  { %569 = vrot.lane.b32.xlu1 %v1335_v1, %s1421_s1 }
 0x92f   :  { %v551_v49 = vpop.permute.xlu0 %550 }
 0x930   :  { %v553_v57 = vmul.f32 %v551_v49, %v518_v46  ;;  %v570_v2 = vpop.permute.xlu1 %569 }
 0x931   :  { %v572_v4 = vmul.f32 %v570_v2, %v533_v47 }
 0x932   :  { %574 = vrot.lane.b32.xlu2 %v553_v57, %s1422_s24 }
 0x933   :  { %578 = vrot.lane.b32.xlu0 %v572_v4, %s1423_s27 }
 0x98c   :  { %v575_v5 = vpop.permute.xlu2 %574 }
 0x9a5   :  { %v579_v27 = vpop.permute.xlu0 %578 }
 0x9a6   :  { %v581_v29 = vsel %vm195_vm6, %v575_v5, %v579_v27  ;;  %v1767_v5 = vld [vmem:[%s1871_s2] ss:$0 sm:$0xff] }
 0x9a7   :  { %1254 = vmatmul.msk.f32.vlgmr.msra.gmra.mxu1 %vm197_vm7, %v581_v29  ;;  %1255 = vmatmul.msk.f32.vlgmr.msra.gmra.mxu2 %vm197_vm7, %v581_v29 }
 0x9a8   :  { %997 = vmatpush.msra.mxu1 %v1501_v28  ;;  %1105 = vmatpush.msra.mxu2 %v1501_v28  ;;  %v121_v28 = vpop.f32.mrf.mxu0 }
 0x9aa   :  { %998 = vmatpush.msra.mxu1 %v1507_v30  ;;  %1106 = vmatpush.msra.mxu2 %v1507_v30  ;;  %v122_v30 = vadd.f32 %v1490_v3, %v121_v28 }
 0x9ac   :  { %999 = vmatpush.msra.mxu1 %v1511_v32  ;;  %1107 = vmatpush.msra.mxu2 %v1511_v32 }
 0x9ae   :  { %1000 = vmatpush.msra.mxu1 %v1519_v34  ;;  %1108 = vmatpush.msra.mxu2 %v1519_v34 }
 0x9b0   :  { %1001 = vmatpush.msra.mxu1 %v1530_v37  ;;  %1109 = vmatpush.msra.mxu2 %v1530_v37 }
 0x9b2   :  { %1002 = vmatpush.msra.mxu1 %v1538_v39  ;;  %1110 = vmatpush.msra.mxu2 %v1538_v39 }
 0x9b4   :  { %1003 = vmatpush.msra.mxu1 %v1546_v41  ;;  %1111 = vmatpush.msra.mxu2 %v1546_v41 }
 0x9b6   :  { %1004 = vmatpush.msra.mxu1 %v1562_v45  ;;  %1112 = vmatpush.msra.mxu2 %v1562_v45 }
 0xa24   :  { %v602_v32 = vpop.f32.mrf.mxu1 }
 0xa25   :  { %v603_v34 = vadd.f32 %v602_v32, %v122_v30 }
 0xa27   :  { %v1256_v31 = vmul.f32 -1.442695, %v603_v34 }
 0xa29   :  { %1336 = vpow2.f32 %v1256_v31 }
 0xa2a   :  { %v622_v37 = vpop.f32.mrf.mxu2 }
 0xa2b   :  { %v623_v33 = vadd.f32 %v1615_v53, %v622_v37 }
 0xa2d   :  { %v1257_v36 = vmul.f32 -1.442695, %v623_v33 }
 0xa2f   :  { %v1337_v39 = vpop.eup %1336  ;;  %1338 = vpow2.f32 %v1257_v36 }
 0xa30   :  { %v631_v6 = vadd.f32 1.0, %v1337_v39 }
 0xa32   :  { %1340 = vrcp.f32 %v631_v6  ;;  %v644_v40 = vand.u32 2147483648, %v631_v6  ;;  %v642_v9 = vand.u32 2147483647, %v631_v6  ;;  %vm638_vm5 = vweird.f32 %v631_v6 }
 0xa34   :  { %v645_v12 = vor.u32 1.1754944e-38, %v644_v40  ;;  %vm643_vm9 = vcmp.eq.f32.partialorder %v642_v9, 8.507059e+37 }
 0xa35   :  { %v1339_v41 = vpop.eup %1338 }
 0xa36   :  { %v632_v7 = vadd.f32 1.0, %v1339_v41 }
 0xa38   :  { %v1341_v38 = vpop.eup %1340  ;;  %1342 = vrcp.f32 %v632_v7  ;;  %v659_v16 = vand.u32 2147483648, %v632_v7  ;;  %v657_v19 = vand.u32 2147483647, %v632_v7  ;;  %vm653_vm11 = vweird.f32 %v632_v7 }
 0xa39   :  { %v634_v45 = vmul.f32 %v1341_v38, %v631_v6  ;;  %vm639_vm4 = vweird.f32 %v1341_v38 }
 0xa3a   :  { %vm640_vm8 = vmor %vm638_vm5, %vm639_vm4  ;;  %v660_v22 = vor.u32 1.1754944e-38, %v659_v16  ;;  %vm658_vm13 = vcmp.eq.f32.partialorder %v657_v19, 8.507059e+37 }
 0xa3b   :  { %v635_v8 = vsub.f32 1.0, %v634_v45 }
 0xa3d   :  { %v636_v3 = vmul.f32 %v1341_v38, %v635_v8 }
 0xa3e   :  { %v1343_v10 = vpop.eup %1342 }
 0xa3f   :  { %v649_v44 = vmul.f32 %v1343_v10, %v632_v7  ;;  %v637_v11 = vadd.f32 %v1341_v38, %v636_v3  ;;  %vm654_vm10 = vweird.f32 %v1343_v10 }
 0xa40   :  { %vm655_vm12 = vmor %vm653_vm11, %vm654_vm10 }
 0xa41   :  { %v650_v13 = vsub.f32 1.0, %v649_v44  ;;  %v641_v14 = vsel %vm640_vm8, %v1341_v38, %v637_v11 }
 0xa42   :  { %v646_v15 = vsel %vm643_vm9, %v645_v12, %v641_v14 }
 0xa43   :  { %v663_v17 = vmul.f32 2.0, %v646_v15  ;;  %v651_v18 = vmul.f32 %v1343_v10, %v650_v13  ;;  %v665_v54 = vmul.f32 %v646_v15, %v1705_v62  ;;  %v55_v62 = vld [vmem:[%s1869_s0 + $0x28] sm:$0xff] }
 0xa44   :  { %1231 = vmatmul.msk.f32.gmra.mxu0 %vm63_vm1, %v55_v62 }
 0xa45   :  { %v1258_v20 = vadd.f32 -1.0, %v663_v17  ;;  %v652_v21 = vadd.f32 %v1343_v10, %v651_v18 }
 0xa47   :  { %667 = vrot.lane.b32.xlu1 %v1258_v20, %s1421_s1  ;;  %v656_v23 = vsel %vm655_vm12, %v1343_v10, %v652_v21 }
 0xa48   :  { %v661_v24 = vsel %vm658_vm13, %v660_v22, %v656_v23 }
 0xa49   :  { %v682_v26 = vmul.f32 2.0, %v661_v24  ;;  %v684_v50 = vmul.f32 %v661_v24, %v1707_v43 }
 0xa4b   :  { %v1259_v35 = vadd.f32 -1.0, %v682_v26 }
 0xa4d   :  { %686 = vrot.lane.b32.xlu2 %v1259_v35, %s1421_s1 }
 0xaa7   :  { %v687_v42 = vpop.permute.xlu2 %686 }
 0xaa8   :  { %v689_v46 = vmul.f32 %v687_v42, %v661_v24 }
 0xaaa   :  { %691 = vrot.lane.b32.xlu1 %v689_v46, %s1421_s1 }
 0xab9   :  { %v668_v47 = vpop.permute.xlu1 %667 }
 0xaba   :  { %v670_v48 = vmul.f32 %v668_v47, %v646_v15 }
 0xabc   :  { %672 = vrot.lane.b32.xlu0 %v670_v48, %s1421_s1 }
 0xac1   :  { %v124_v2 = vpop.f32.mrf.mxu0 }
 0xac2   :  { %v125_v27 = vadd.f32 %v1767_v5, %v124_v2 }
 0xb1c   :  { %v692_v51 = vpop.permute.xlu1 %691 }
 0xb1d   :  { %v1745_v52 = vadd.f32 %v692_v51, %v684_v50 }
 0xb1f   :  { %1344 = vtanh.f32 %v1745_v52 }
 0xb25   :  { %v1345_v25 = vpop.eup %1344 }
 0xb26   :  { %697 = vrot.lane.b32.xlu0 %v1345_v25, %s1421_s1 }
 0xb2e   :  { %v673_v55 = vpop.permute.xlu0 %672 }
 0xb2f   :  { %v1750_v56 = vadd.f32 %v673_v55, %v665_v54 }
 0xb31   :  { %1346 = vtanh.f32 %v1750_v56 }
 0xb37   :  { %v1347_v58 = vpop.eup %1346 }
 0xb38   :  { %678 = vrot.lane.b32.xlu2 %v1347_v58, %s1421_s1 }
 0xb92   :  { %v679_v59 = vpop.permute.xlu2 %678 }
 0xb93   :  { %v681_v60 = vmul.f32 %v679_v59, %v646_v15 }
 0xb95   :  { %702 = vrot.lane.b32.xlu1 %v681_v60, %s1422_s24 }
 0xb98   :  { %v698_v63 = vpop.permute.xlu0 %697 }
 0xb99   :  { %v700_v43 = vmul.f32 %v698_v63, %v661_v24 }
 0xb9b   :  { %706 = vrot.lane.b32.xlu2 %v700_v43, %s1423_s27 }
 0xbf5   :  { %v707_v0 = vpop.permute.xlu2 %706 }
 0xc07   :  { %v703_v1 = vpop.permute.xlu1 %702 }
 0xc08   :  { %v709_v49 = vsel %vm195_vm6, %v703_v1, %v707_v0 }
 0xc09   :  { %1260 = vmatmul.msk.f32.vlgmr.msra.gmra.mxu3 %vm197_vm7, %v709_v49  ;;  %1261 = vmatmul.msk.f32.vlgmr.msrb.gmra.mxu1 %vm197_vm7, %v709_v49 }
 0xc86   :  { %v750_v57 = vpop.f32.mrf.mxu1 }
 0xc87   :  { %v751_v4 = vadd.f32 %v1615_v53, %v750_v57 }
 0xc89   :  { %v1263_v61 = vmul.f32 -1.442695, %v751_v4 }
 0xc8b   :  { %1348 = vpow2.f32 %v1263_v61 }
 0xc8c   :  { %v730_v29 = vpop.f32.mrf.mxu3 }
 0xc8d   :  { %v731_v28 = vadd.f32 %v730_v29, %v125_v27 }
 0xc8f   :  { %v1262_v30 = vmul.f32 -1.442695, %v731_v28 }
 0xc91   :  { %v1349_v32 = vpop.eup %1348  ;;  %1350 = vpow2.f32 %v1262_v30 }
 0xc92   :  { %v760_v34 = vadd.f32 1.0, %v1349_v32 }
 0xc94   :  { %1352 = vrcp.f32 %v760_v34  ;;  %v787_v6 = vand.u32 2147483648, %v760_v34  ;;  %v785_v7 = vand.u32 2147483647, %v760_v34  ;;  %vm781_vm15 = vweird.f32 %v760_v34 }
 0xc96   :  { %v788_v40 = vor.u32 1.1754944e-38, %v787_v6  ;;  %vm786_vm2 = vcmp.eq.f32.partialorder %v785_v7, 8.507059e+37 }
 0xc97   :  { %v1351_v31 = vpop.eup %1350 }
 0xc98   :  { %v759_v37 = vadd.f32 1.0, %v1351_v31 }
 0xc9a   :  { %v1353_v33 = vpop.eup %1352  ;;  %1354 = vrcp.f32 %v759_v37  ;;  %v772_v44 = vand.u32 2147483648, %v759_v37  ;;  %v770_v13 = vand.u32 2147483647, %v759_v37  ;;  %vm766_vm4 = vweird.f32 %v759_v37 }
 0xc9b   :  { %v777_v36 = vmul.f32 %v1353_v33, %v760_v34  ;;  %vm782_vm14 = vweird.f32 %v1353_v33 }
 0xc9c   :  { %vm783_vm0 = vmor %vm781_vm15, %vm782_vm14  ;;  %v773_v16 = vor.u32 1.1754944e-38, %v772_v44  ;;  %vm771_vm8 = vcmp.eq.f32.partialorder %v770_v13, 8.507059e+37 }
 0xc9d   :  { %v778_v39 = vsub.f32 1.0, %v777_v36 }
 0xc9f   :  { %v779_v41 = vmul.f32 %v1353_v33, %v778_v39 }
 0xca0   :  { %v1355_v38 = vpop.eup %1354 }
 0xca1   :  { %v762_v45 = vmul.f32 %v1355_v38, %v759_v37  ;;  %v780_v8 = vadd.f32 %v1353_v33, %v779_v41  ;;  %vm767_vm3 = vweird.f32 %v1355_v38 }
 0xca2   :  { %vm768_vm5 = vmor %vm766_vm4, %vm767_vm3 }
 0xca3   :  { %v763_v3 = vsub.f32 1.0, %v762_v45  ;;  %v784_v9 = vsel %vm783_vm0, %v1353_v33, %v780_v8 }
 0xca4   :  { %v789_v10 = vsel %vm786_vm2, %v788_v40, %v784_v9 }
 0xca5   :  { %v810_v11 = vmul.f32 2.0, %v789_v10  ;;  %v764_v12 = vmul.f32 %v1355_v38, %v763_v3  ;;  %v812_v47 = vmul.f32 %v789_v10, %v1745_v52  ;;  %v56_v52 = vld [vmem:[%s1869_s0 + $0x30] sm:$0xff] }
 0xca6   :  { %1232 = vmatmul.msk.f32.gmra.mxu0 %vm63_vm1, %v56_v52 }
 0xca7   :  { %v1265_v14 = vadd.f32 -1.0, %v810_v11  ;;  %v765_v15 = vadd.f32 %v1355_v38, %v764_v12 }
 0xca9   :  { %814 = vrot.lane.b32.xlu1 %v1265_v14, %s1421_s1  ;;  %v769_v17 = vsel %vm768_vm5, %v1355_v38, %v765_v15 }
 0xcaa   :  { %v774_v18 = vsel %vm771_vm8, %v773_v16, %v769_v17 }
 0xcab   :  { %v791_v19 = vmul.f32 2.0, %v774_v18  ;;  %v793_v26 = vmul.f32 %v774_v18, %v1750_v56 }
 0xcad   :  { %v1264_v20 = vadd.f32 -1.0, %v791_v19 }
 0xcaf   :  { %795 = vrot.lane.b32.xlu0 %v1264_v20, %s1421_s1 }
 0xd1b   :  { %v815_v21 = vpop.permute.xlu1 %814 }
 0xd1c   :  { %v817_v22 = vmul.f32 %v815_v21, %v789_v10 }
 0xd1e   :  { %819 = vrot.lane.b32.xlu0 %v817_v22, %s1421_s1 }
 0xd21   :  { %v796_v23 = vpop.permute.xlu0 %795 }
 0xd22   :  { %v798_v24 = vmul.f32 %v796_v23, %v774_v18 }
 0xd23   :  { %v127_v63 = vpop.f32.mrf.mxu0 }
 0xd24   :  { %800 = vrot.lane.b32.xlu2 %v798_v24, %s1421_s1  ;;  %v128_v43 = vadd.f32 %v1767_v5, %v127_v63 }
 0xd7e   :  { %v801_v35 = vpop.permute.xlu2 %800 }
 0xd7f   :  { %v1775_v42 = vadd.f32 %v801_v35, %v793_v26 }
 0xd81   :  { %1356 = vtanh.f32 %v1775_v42 }
 0xd87   :  { %v1357_v46 = vpop.eup %1356 }
 0xd88   :  { %806 = vrot.lane.b32.xlu1 %v1357_v46, %s1421_s1 }
 0xd90   :  { %v820_v48 = vpop.permute.xlu0 %819 }
 0xd91   :  { %v1780_v50 = vadd.f32 %v820_v48, %v812_v47  ;;  %v57_v48 = vld [vmem:[%s1869_s0 + $0x38] sm:$0xff] }
 0xd92   :  { %1233 = vmatmul.msk.f32.gmra.mxu0 %vm63_vm1, %v57_v48 }
 0xd93   :  { %1358 = vtanh.f32 %v1780_v50 }
 0xd99   :  { %v1359_v51 = vpop.eup %1358 }
 0xd9a   :  { %825 = vrot.lane.b32.xlu2 %v1359_v51, %s1421_s1 }
 0xdf4   :  { %v826_v25 = vpop.permute.xlu2 %825 }
 0xdf5   :  { %v828_v54 = vmul.f32 %v826_v25, %v789_v10 }
 0xdf7   :  { %834 = vrot.lane.b32.xlu1 %v828_v54, %s1423_s27 }
 0xdfa   :  { %v807_v55 = vpop.permute.xlu1 %806 }
 0xdfb   :  { %v809_v56 = vmul.f32 %v807_v55, %v774_v18 }
 0xdfd   :  { %830 = vrot.lane.b32.xlu0 %v809_v56, %s1422_s24 }
 0xe0f   :  { %v130_v54 = vpop.f32.mrf.mxu0 }
 0xe10   :  { %v131_v55 = vadd.f32 %v1767_v5, %v130_v54 }
 0xe69   :  { %v835_v58 = vpop.permute.xlu1 %834 }
 0xe6f   :  { %v831_v59 = vpop.permute.xlu0 %830 }
 0xe70   :  { %v837_v60 = vsel %vm195_vm6, %v831_v59, %v835_v58  ;;  %v1822_v59 = vld [vmem:[%s1873_s4] ss:$0 sm:$0xff] }
 0xe71   :  { %1266 = vmatmul.msk.f32.vlgmr.msrb.gmra.mxu2 %vm197_vm7, %v837_v60  ;;  %1267 = vmatmul.msk.f32.vlgmr.msrb.gmra.mxu3 %vm197_vm7, %v837_v60 }
 0xef4   :  { %v858_v62 = vpop.f32.mrf.mxu2  ;;  %v878_v0 = vpop.f32.mrf.mxu3 }
 0xef5   :  { %v859_v1 = vadd.f32 %v858_v62, %v128_v43  ;;  %v879_v49 = vadd.f32 %v1615_v53, %v878_v0 }
 0xef7   :  { %v1268_v57 = vmul.f32 -1.442695, %v859_v1  ;;  %v1269_v2 = vmul.f32 -1.442695, %v879_v49 }
 0xef9   :  { %1360 = vpow2.f32 %v1268_v57 }
 0xefa   :  { %1362 = vpow2.f32 %v1269_v2 }
 0xeff   :  { %v1361_v4 = vpop.eup %1360 }
 0xf00   :  { %v1363_v61 = vpop.eup %1362  ;;  %v887_v27 = vadd.f32 1.0, %v1361_v4 }
 0xf01   :  { %v888_v29 = vadd.f32 1.0, %v1363_v61 }
 0xf02   :  { %1364 = vrcp.f32 %v887_v27  ;;  %v900_v33 = vand.u32 2147483648, %v887_v27  ;;  %v898_v53 = vand.u32 2147483647, %v887_v27  ;;  %vm894_vm11 = vweird.f32 %v887_v27 }
 0xf03   :  { %1366 = vrcp.f32 %v888_v29  ;;  %v915_v36 = vand.u32 2147483648, %v888_v29  ;;  %v913_v41 = vand.u32 2147483647, %v888_v29  ;;  %vm909_vm12 = vweird.f32 %v888_v29 }
 0xf04   :  { %v901_v45 = vor.u32 1.1754944e-38, %v900_v33  ;;  %vm899_vm15 = vcmp.eq.f32.partialorder %v898_v53, 8.507059e+37 }
 0xf05   :  { %v916_v8 = vor.u32 1.1754944e-38, %v915_v36  ;;  %vm914_vm0 = vcmp.eq.f32.partialorder %v913_v41, 8.507059e+37 }
 0xf08   :  { %v1365_v28 = vpop.eup %1364 }
 0xf09   :  { %v1367_v30 = vpop.eup %1366  ;;  %v890_v32 = vmul.f32 %v1365_v28, %v887_v27  ;;  %vm895_vm9 = vweird.f32 %v1365_v28 }
 0xf0a   :  { %v905_v34 = vmul.f32 %v1367_v30, %v888_v29  ;;  %vm910_vm10 = vweird.f32 %v1367_v30  ;;  %vm896_vm13 = vmor %vm894_vm11, %vm895_vm9 }
 0xf0b   :  { %v891_v31 = vsub.f32 1.0, %v890_v32  ;;  %vm911_vm14 = vmor %vm909_vm12, %vm910_vm10 }
 0xf0c   :  { %v906_v37 = vsub.f32 1.0, %v905_v34 }
 0xf0d   :  { %v892_v39 = vmul.f32 %v1365_v28, %v891_v31 }
 0xf0e   :  { %v907_v6 = vmul.f32 %v1367_v30, %v906_v37 }
 0xf0f   :  { %v893_v7 = vadd.f32 %v1365_v28, %v892_v39 }
 0xf10   :  { %v908_v38 = vadd.f32 %v1367_v30, %v907_v6 }
 0xf11   :  { %v897_v40 = vsel %vm896_vm13, %v1365_v28, %v893_v7 }
 0xf12   :  { %v912_v3 = vsel %vm911_vm14, %v1367_v30, %v908_v38  ;;  %v902_v9 = vsel %vm899_vm15, %v901_v45, %v897_v40  ;;  %vm1217_vm14 = vcmask 7168  }
 0xf13   :  { %v917_v10 = vsel %vm914_vm0, %v916_v8, %v912_v3  ;;  %v919_v44 = vmul.f32 2.0, %v902_v9  ;;  %v921_v18 = vmul.f32 %v902_v9, %v1775_v42 }
 0xf14   :  { %v938_v11 = vmul.f32 2.0, %v917_v10  ;;  %v940_v20 = vmul.f32 %v917_v10, %v1780_v50 }
 0xf15   :  { %v1270_v12 = vadd.f32 -1.0, %v919_v44 }
 0xf16   :  { %v1271_v13 = vadd.f32 -1.0, %v938_v11 }
 0xf17   :  { %923 = vrot.lane.b32.xlu2 %v1270_v12, %s1421_s1 }
 0xf18   :  { %942 = vrot.lane.b32.xlu0 %v1271_v13, %s1421_s1 }
 0xf71   :  { %v924_v14 = vpop.permute.xlu2 %923 }
 0xf72   :  { %v926_v15 = vmul.f32 %v924_v14, %v902_v9 }
 0xf74   :  { %928 = vrot.lane.b32.xlu1 %v926_v15, %s1421_s1 }
 0xf8a   :  { %v943_v16 = vpop.permute.xlu0 %942 }
 0xf8b   :  { %v945_v17 = vmul.f32 %v943_v16, %v917_v10 }
 0xf8d   :  { %947 = vrot.lane.b32.xlu2 %v945_v17, %s1421_s1 }
 0xfe6   :  { %v929_v19 = vpop.permute.xlu1 %928 }
 0xfe7   :  { %v1801_v21 = vadd.f32 %v929_v19, %v921_v18  ;;  %v948_v22 = vpop.permute.xlu2 %947 }
 0xfe8   :  { %v1803_v23 = vadd.f32 %v948_v22, %v940_v20 }
 0xfe9   :  { %1368 = vtanh.f32 %v1801_v21 }
 0xfea   :  { %1370 = vtanh.f32 %v1803_v23 }
 0xfef   :  { %v1369_v24 = vpop.eup %1368 }
 0xff0   :  { %v1371_v26 = vpop.eup %1370  ;;  %934 = vrot.lane.b32.xlu0 %v1369_v24, %s1421_s1 }
 0xff1   :  { %953 = vrot.lane.b32.xlu1 %v1371_v26, %s1421_s1 }
0x1062   :  { %v935_v35 = vpop.permute.xlu0 %934 }
0x1063   :  { %v937_v42 = vmul.f32 %v935_v35, %v902_v9  ;;  %v954_v46 = vpop.permute.xlu1 %953 }
0x1064   :  { %v956_v47 = vmul.f32 %v954_v46, %v917_v10 }
0x1065   :  { %958 = vrot.lane.b32.xlu2 %v937_v42, %s1422_s24 }
0x1066   :  { %962 = vrot.lane.b32.xlu0 %v956_v47, %s1423_s27 }
0x10bf   :  { %v959_v50 = vpop.permute.xlu2 %958 }
0x10d8   :  { %v963_v51 = vpop.permute.xlu0 %962 }
0x10d9   :  { %v965_v25 = vsel %vm195_vm6, %v959_v50, %v963_v51 }
0x10da   :  { %1272 = vmatmul.msk.f32.vlgmr.msrb.gmra.mxu0 %vm197_vm7, %v965_v25  ;;  %1273 = vmatmul.msk.f32.vlgmr.msra.gmra.mxu1 %vm197_vm7, %v965_v25 }
0x1157   :  { %v986_v56 = vpop.f32.mrf.mxu0  ;;  %v1006_v52 = vpop.f32.mrf.mxu1 }
0x1158   :  { %v987_v58 = vadd.f32 %v986_v56, %v131_v55  ;;  %v1007_v60 = vadd.f32 %v1822_v59, %v1006_v52 }
0x115a   :  { %v1274_v63 = vmul.f32 -1.442695, %v987_v58  ;;  %v1275_v43 = vmul.f32 -1.442695, %v1007_v60 }
0x115c   :  { %1372 = vpow2.f32 %v1274_v63 }
0x115d   :  { %1374 = vpow2.f32 %v1275_v43 }
0x1162   :  { %v1373_v62 = vpop.eup %1372 }
0x1163   :  { %v1375_v0 = vpop.eup %1374  ;;  %v1015_v1 = vadd.f32 1.0, %v1373_v62 }
0x1164   :  { %v1016_v49 = vadd.f32 1.0, %v1375_v0  ;;  %v1161_v0 = vld [vmem:[%s1874_s5 + $0x18] sm:$0xff] }
0x1165   :  { %1376 = vrcp.f32 %v1015_v1  ;;  %v1028_v29 = vand.u32 2147483648, %v1015_v1  ;;  %v1026_v32 = vand.u32 2147483647, %v1015_v1  ;;  %vm1022_vm3 = vweird.f32 %v1015_v1  ;;  %1188 = vmatpush.msra.mxu3 %v1161_v0 }
0x1166   :  { %1378 = vrcp.f32 %v1016_v49  ;;  %v1043_v28 = vand.u32 2147483648, %v1016_v49  ;;  %v1041_v31 = vand.u32 2147483647, %v1016_v49  ;;  %vm1037_vm4 = vweird.f32 %v1016_v49 }
0x1167   :  { %v1029_v36 = vor.u32 1.1754944e-38, %v1028_v29  ;;  %vm1027_vm9 = vcmp.eq.f32.partialorder %v1026_v32, 8.507059e+37 }
0x1168   :  { %v1044_v39 = vor.u32 1.1754944e-38, %v1043_v28  ;;  %vm1042_vm10 = vcmp.eq.f32.partialorder %v1041_v31, 8.507059e+37 }
0x116b   :  { %v1377_v5 = vpop.eup %1376 }
0x116c   :  { %v1379_v57 = vpop.eup %1378  ;;  %v1018_v2 = vmul.f32 %v1377_v5, %v1015_v1  ;;  %vm1023_vm1 = vweird.f32 %v1377_v5  ;;  %v1160_v1 = vld [vmem:[%s1874_s5 + $0x10] sm:$0xff] }
0x116d   :  { %v1033_v4 = vmul.f32 %v1379_v57, %v1016_v49  ;;  %vm1038_vm2 = vweird.f32 %v1379_v57  ;;  %vm1024_vm5 = vmor %vm1022_vm3, %vm1023_vm1  ;;  %v1159_v49 = vld [vmem:[%s1874_s5 + $0x8] sm:$0xff]  ;;  %1189 = vmatpush.msra.mxu3 %v1160_v1 }
0x116e   :  { %v1019_v61 = vsub.f32 1.0, %v1018_v2  ;;  %vm1039_vm8 = vmor %vm1037_vm4, %vm1038_vm2 }
0x116f   :  { %v1034_v27 = vsub.f32 1.0, %v1033_v4  ;;  %1190 = vmatpush.msra.mxu3 %v1159_v49 }
0x1170   :  { %v1020_v30 = vmul.f32 %v1377_v5, %v1019_v61 }
0x1171   :  { %v1035_v34 = vmul.f32 %v1379_v57, %v1034_v27 }
0x1172   :  { %v1021_v37 = vadd.f32 %v1377_v5, %v1020_v30  ;;  %v1291_v30 = vld [vmem:[%s1875_s6] ss:$0 sm:$0xff] }
0x1173   :  { %v1036_v33 = vadd.f32 %v1379_v57, %v1035_v34 }
0x1174   :  { %v1025_v53 = vsel %vm1024_vm5, %v1377_v5, %v1021_v37  ;;  %v1158_v5 = vld [vmem:[%s1874_s5] sm:$0xff] }
0x1175   :  { %v1040_v6 = vsel %vm1039_vm8, %v1379_v57, %v1036_v33  ;;  %v1030_v41 = vsel %vm1027_vm9, %v1029_v36, %v1025_v53  ;;  %1191 = vmatpush.msra.mxu3 %v1158_v5  ;;  %v1292_v37 = vld [vmem:[%s1876_s7] ss:$0 sm:$0xff] }
0x1176   :  { %v1045_v7 = vsel %vm1042_vm10, %v1044_v39, %v1040_v6  ;;  %v1047_v38 = vmul.f32 2.0, %v1030_v41  ;;  %v1049_v15 = vmul.f32 %v1030_v41, %v1801_v21  ;;  %v1293_v6 = vld [vmem:[#allocation2] ss:$0 sm:$0xff] }
0x1177   :  { %v1066_v45 = vmul.f32 2.0, %v1045_v7  ;;  %v1068_v11 = vmul.f32 %v1045_v7, %v1803_v23 }
0x1178   :  { %v1276_v8 = vadd.f32 -1.0, %v1047_v38 }
0x1179   :  { %v1277_v40 = vadd.f32 -1.0, %v1066_v45 }
0x117a   :  { %1051 = vrot.lane.b32.xlu1 %v1276_v8, %s1421_s1 }
0x117b   :  { %1070 = vrot.lane.b32.xlu2 %v1277_v40, %s1421_s1 }
0x11d5   :  { %v1071_v3 = vpop.permute.xlu2 %1070 }
0x11d6   :  { %v1073_v9 = vmul.f32 %v1071_v3, %v1045_v7 }
0x11d8   :  { %1075 = vrot.lane.b32.xlu1 %v1073_v9, %s1421_s1 }
0x11ec   :  { %v1052_v10 = vpop.permute.xlu1 %1051 }
0x11ed   :  { %v1054_v44 = vmul.f32 %v1052_v10, %v1030_v41 }
0x11ef   :  { %1056 = vrot.lane.b32.xlu0 %v1054_v44, %s1421_s1 }
0x124a   :  { %v1076_v12 = vpop.permute.xlu1 %1075 }
0x124b   :  { %v1078_v13 = vadd.f32 %v1076_v12, %v1068_v11 }
0x124d   :  { %1380 = vtanh.f32 %v1078_v13 }
0x1253   :  { %v1381_v14 = vpop.eup %1380 }
0x1254   :  { %1081 = vrot.lane.b32.xlu0 %v1381_v14, %s1421_s1 }
0x1261   :  { %v1057_v16 = vpop.permute.xlu0 %1056 }
0x1262   :  { %v1059_v17 = vadd.f32 %v1057_v16, %v1049_v15 }
0x1264   :  { %1382 = vtanh.f32 %v1059_v17 }
0x126a   :  { %v1383_v18 = vpop.eup %1382 }
0x126b   :  { %1062 = vrot.lane.b32.xlu2 %v1383_v18, %s1421_s1 }
0x12c5   :  { %v1063_v19 = vpop.permute.xlu2 %1062 }
0x12c6   :  { %v1065_v20 = vmul.f32 %v1063_v19, %v1030_v41  ;;  %v1082_v22 = vpop.permute.xlu0 %1081 }
0x12c7   :  { %v1084_v24 = vmul.f32 %v1082_v22, %v1045_v7 }
0x12c8   :  { %1086 = vrot.lane.b32.xlu1 %v1065_v20, %s1422_s24  ;;  %v1156_v62 = vmax.f32 %v1065_v20, 0.0 }
0x12c9   :  { %1090 = vrot.lane.b32.xlu2 %v1084_v24, %s1423_s27 }
0x1323   :  { %v1091_v23 = vpop.permute.xlu2 %1090 }
0x133a   :  { %v1087_v26 = vpop.permute.xlu1 %1086 }
0x133b   :  { %v1093_v35 = vsel %vm195_vm6, %v1087_v26, %v1091_v23 }
0x133c   :  { %1278 = vmatmul.msk.f32.vlgmr.msra.gmra.mxu2 %vm197_vm7, %v1093_v35 }
0x13bf   :  { %v1114_v21 = vpop.f32.mrf.mxu2 }
0x13c0   :  { %v1117_v42 = vadd.f32 %v1822_v59, %v1114_v21 }
0x13c2   :  { %v1279_v46 = vmul.f32 -1.442695, %v1117_v42 }
0x13c4   :  { %1384 = vpow2.f32 %v1279_v46 }
0x13ca   :  { %v1385_v47 = vpop.eup %1384 }
0x13cb   :  { %v1121_v48 = vadd.f32 1.0, %v1385_v47 }
0x13cd   :  { %1386 = vrcp.f32 %v1121_v48  ;;  %v1133_v54 = vand.u32 2147483648, %v1121_v48  ;;  %v1131_v56 = vand.u32 2147483647, %v1121_v48  ;;  %vm1127_vm12 = vweird.f32 %v1121_v48 }
0x13cf   :  { %v1134_v58 = vor.u32 1.1754944e-38, %v1133_v54  ;;  %vm1132_vm7 = vcmp.eq.f32.partialorder %v1131_v56, 8.507059e+37 }
0x13d3   :  { %v1387_v50 = vpop.eup %1386 }
0x13d4   :  { %v1123_v51 = vmul.f32 %v1387_v50, %v1121_v48  ;;  %vm1128_vm11 = vweird.f32 %v1387_v50 }
0x13d5   :  { %vm1129_vm13 = vmor %vm1127_vm12, %vm1128_vm11 }
0x13d6   :  { %v1124_v25 = vsub.f32 1.0, %v1123_v51 }
0x13d8   :  { %v1125_v55 = vmul.f32 %v1387_v50, %v1124_v25 }
0x13da   :  { %v1126_v52 = vadd.f32 %v1387_v50, %v1125_v55 }
0x13dc   :  { %v1130_v60 = vsel %vm1129_vm13, %v1387_v50, %v1126_v52 }
0x13dd   :  { %v1135_v63 = vsel %vm1132_vm7, %v1134_v58, %v1130_v60 }
0x13de   :  { %v1137_v59 = vmul.f32 2.0, %v1135_v63  ;;  %v1139_v61 = vmul.f32 %v1135_v63, %v1078_v13 }
0x13e0   :  { %v1280_v43 = vadd.f32 -1.0, %v1137_v59 }
0x13e2   :  { %1141 = vrot.lane.b32.xlu0 %v1280_v43, %s1421_s1 }
0x13ea   :  { %1168 = vrot.lane.b32.xlu0 %v1156_v62, %s1422_s24 }
0x1454   :  { %v1142_v57 = vpop.permute.xlu0 %1141 }
0x1455   :  { %v1144_v2 = vmul.f32 %v1142_v57, %v1135_v63 }
0x1457   :  { %1146 = vrot.lane.b32.xlu1 %v1144_v2, %s1421_s1 }
0x145c   :  { %v1169_v4 = vpop.permute.xlu0 %1168 }
0x145d   :  { %1281 = vmatmul.msk.f32.vlgmr.msra.gmra.mxu3 %vm195_vm6, %v1169_v4 }
0x14c9   :  { %v1147_v27 = vpop.permute.xlu1 %1146 }
0x14ca   :  { %v1149_v29 = vadd.f32 %v1147_v27, %v1139_v61 }
0x14cc   :  { %1388 = vtanh.f32 %v1149_v29 }
0x14d2   :  { %v1389_v28 = vpop.eup %1388 }
0x14d3   :  { %1152 = vrot.lane.b32.xlu2 %v1389_v28, %s1421_s1 }
0x14e0   :  { %v1193_v32 = vpop.f32.mrf.mxu3 }
0x14e1   :  { %v1194_v34 = vadd.f32 %v1291_v30, %v1193_v32 }
0x14e3   :  { %v1199_v31 = vmax.f32 %v1194_v34, 0.0 }
0x14e5   :  { %v1205_v33 = vmul.f32 %v1292_v37, %v1199_v31 }
0x14fc   :  { %1207 = vadd.xlane.f32.xlu2 %v1205_v33 }
0x152d   :  { %v1153_v36 = vpop.permute.xlu2 %1152 }
0x152e   :  { %v1155_v39 = vmul.f32 %v1153_v36, %v1135_v63 }
0x1530   :  { %v1157_v53 = vmax.f32 %v1155_v39, 0.0 }
0x1532   :  { %1170 = vrot.lane.b32.xlu1 %v1157_v53, %s1422_s24 }
0x156f   :  { %v1208_v41 = vpop.xlane.xlu2 %1207 }
0x1570   :  { %v1215_v7 = vadd.f32 %v1293_v6, %v1208_v41 }
0x1572   :  { %1218 = vst.msk [vmem:[%s1878_s9] sm:$0xff] %vm1217_vm14, %v1215_v7 }
0x15a4   :  { %v1171_v38 = vpop.permute.xlu1 %1170 }
0x15a5   :  { %1282 = vmatmul.msk.f32.gmra.mxu3 %vm195_vm6, %v1171_v38 }
0x1628   :  { %v1196_v45 = vpop.f32.mrf.mxu3 }
0x1629   :  { %v1197_v8 = vadd.f32 %v1291_v30, %v1196_v45 }
0x162b   :  { %v1200_v40 = vmax.f32 %v1197_v8, 0.0 }
0x162d   :  { %v1206_v3 = vmul.f32 %v1292_v37, %v1200_v40 }
0x162f   :  { %1209 = vadd.xlane.f32.xlu0 %v1206_v3 }
0x16a2   :  { %v1210_v9 = vpop.xlane.xlu0 %1209 }
0x16a3   :  { %v1216_v10 = vadd.f32 %v1293_v6, %v1210_v9 }
0x16a5   :  { %1219 = vst.msk [vmem:[%s1878_s9 + $0x8] sm:$0xff] %vm1217_vm14, %v1216_v10 }
0x16a6   :  { %1224 = vsyncpa [#allocation4], 1 }

</bundles_post_ra>
